<compile_context>
chip_gen: v5e
topology: v5e:2x2
jax: 0.10.0
libtpu: 0.0.40
codegen_flags: <defaults>
</compile_context>

<pallas_src>
from functools import partial

import jax
import jax.numpy as jnp
from jax.experimental import pallas as pl
from jax.experimental.pallas import tpu as pltpu

LEAKY_SLOPE = 0.01  # nn.LeakyReLU default


def _hardswish(v):
    # nn.Hardswish: x * relu6(x + 3) / 6
    return v * jnp.clip(v + 3.0, 0.0, 6.0) * (1.0 / 6.0)


# ---------------------------------------------------------------------------
# Static slab layout shared by pack_params (host) and the kernel (trace time).
# ---------------------------------------------------------------------------
def _slab_layout(mid, c, h, w, action_dim):
    shapes = {
        "wh1": (c * w, 2 * mid), "wh2": (2 * mid, mid),
        "ww1": (c * h, 2 * mid), "ww2": (2 * mid, mid),
        "lh": (h * mid, 4 * mid), "lw": (w * mid, 4 * mid),
        "w1": (4 * mid, mid), "d1w": (mid, mid),
        "d2w": (2 * mid, 2 * mid), "wo": (4 * mid, action_dim),
    }
    lanes = max(s[1] for s in shapes.values())
    lanes = ((lanes + 127) // 128) * 128
    w_off, off = {}, 0
    for k, (r, _) in shapes.items():
        w_off[k] = off
        off += ((r + 15) // 16) * 16          # bf16 sublane-pack aligned starts
    w_rows = ((off + 15) // 16) * 16

    bias_order = ("bh1", "bh2", "bw1", "bw2", "blhw", "b1", "d1b", "d2b", "bo")
    b_row = {k: i for i, k in enumerate(bias_order)}
    b_rows = ((len(bias_order) + 7) // 8) * 8
    return shapes, lanes, w_off, w_rows, b_row, b_rows


# ---------------------------------------------------------------------------
# Single fused Pallas kernel.
# ---------------------------------------------------------------------------
def _fused_actor_kernel(xh_ref, xw_ref, w_ref, b_ref, act_ref, *,
                        B, Bp, H, W, mid, action_dim, shapes, w_off, b_row):
    f32, bf16 = jnp.float32, jnp.bfloat16
    F4 = 4 * mid

    def wt(name):                                   # bf16 weight block
        r, c = shapes[name]
        o = w_off[name]
        return w_ref[o:o + r, :c]

    def bias(name, width):                          # f32 (1, width) bias row
        r = b_row[name]
        return b_ref[r:r + 1, :width]

    def conv_branch(x_ref, w1, b1, w2, b2):
        # conv (1,W)/(H,1) as matmul + bias -> LeakyReLU -> 1x1 conv -> ReLU
        h1 = jnp.dot(x_ref[...], wt(w1), preferred_element_type=f32) + bias(b1, 2 * mid)
        h1 = jnp.maximum(h1, LEAKY_SLOPE * h1)       # LeakyReLU (2 VPU ops)
        y = jnp.dot(h1.astype(bf16), wt(w2), preferred_element_type=f32) + bias(b2, mid)
        return jnp.maximum(y, 0.0).astype(bf16)      # (S*Bp, mid)

    yh = conv_branch(xh_ref, "wh1", "bh1", "wh2", "bh2")   # (H*Bp, mid)
    yw = conv_branch(xw_ref, "ww1", "bw1", "ww2", "bw2")   # (W*Bp, mid)

    def flatten(y, S):
        # rows are s*Bp + b  ->  (Bp, S*mid) via a lane concat (no relayout DMA)
        return jnp.concatenate([y[s * Bp:(s + 1) * Bp, :] for s in range(S)], axis=1)

    # BiConvNet output: two single K=S*mid matmuls + merged bias.
    bi = (jnp.dot(flatten(yh, H), wt("lh"), preferred_element_type=f32)
          + jnp.dot(flatten(yw, W), wt("lw"), preferred_element_type=f32)
          + bias("blhw", F4))                               # (Bp, 4*mid)

    # Linear(4*mid -> mid) + ReLU
    x1 = jnp.maximum(
        jnp.dot(bi.astype(bf16), wt("w1"), preferred_element_type=f32)
        + bias("b1", mid), 0.0)

    # DenseNet(mid): concatenations done in-register, single dots.
    d1 = _hardswish(
        jnp.dot(x1.astype(bf16), wt("d1w"), preferred_element_type=f32)
        + bias("d1b", mid))
    x2 = jnp.concatenate([x1, d1], axis=1)                  # (Bp, 2*mid)
    d2 = _hardswish(
        jnp.dot(x2.astype(bf16), wt("d2w"), preferred_element_type=f32)
        + bias("d2b", 2 * mid))
    x3 = jnp.concatenate([x2, d2], axis=1)                  # (Bp, 4*mid)

    # ReLU(cat) @ Wo + bo  (single K=4*mid dot)
    a = (jnp.dot(jnp.maximum(x3, 0.0).astype(bf16), wt("wo"),
                 preferred_element_type=f32)
         + bias("bo", action_dim))                          # (Bp, action_dim)

    # action * (sum over ALL real elements of action^2) ** -0.5
    # padded batch rows are masked out of the sum; wrapper drops them.
    row = jax.lax.broadcasted_iota(jnp.int32, a.shape, 0)
    s = jnp.sum(jnp.where(row < B, a * a, 0.0))
    act_ref[...] = a * jax.lax.rsqrt(s)


# ---------------------------------------------------------------------------
# Host-side one-time parameter packing into two slabs.
# ---------------------------------------------------------------------------
def pack_params(p):
    mid = p["d1w"].shape[0]
    h = p["lh"].shape[0] // mid
    w = p["lw"].shape[0] // mid
    c = p["wh1"].shape[0] // w
    action_dim = p["wo"].shape[1]
    shapes, lanes, w_off, w_rows, b_row, b_rows = _slab_layout(mid, c, h, w, action_dim)

    weights = {"wh1": p["wh1"], "wh2": p["wh2"], "ww1": p["ww1"], "ww2": p["ww2"],
               "lh": p["lh"], "lw": p["lw"], "w1": p["w1"], "d1w": p["d1w"],
               "d2w": p["d2w"], "wo": p["wo"]}
    wslab = jnp.zeros((w_rows, lanes), jnp.bfloat16)
    for k, v in weights.items():
        r, cd = v.shape
        wslab = wslab.at[w_off[k]:w_off[k] + r, :cd].set(v.astype(jnp.bfloat16))

    biases = {"bh1": p["bh1"], "bh2": p["bh2"], "bw1": p["bw1"], "bw2": p["bw2"],
              "blhw": p["blh"] + p["blw"], "b1": p["b1"], "d1b": p["d1b"],
              "d2b": p["d2b"], "bo": p["bo"]}
    bslab = jnp.zeros((b_rows, lanes), jnp.float32)
    for k, v in biases.items():
        bslab = bslab.at[b_row[k]:b_row[k] + 1, :v.shape[-1]].set(v)

    return wslab, bslab, mid, action_dim


# ---------------------------------------------------------------------------
# Wrapper: one fused pallas_call (4 inputs, 1 output, no grid).
# ---------------------------------------------------------------------------
@partial(jax.jit, static_argnums=(3, 4))
def actor_biconv_forward(state, wslab, bslab, mid, action_dim):
    """state: (B, C, H, W) float32 NCHW.  Returns action (B, action_dim)."""
    B, C, H, W = state.shape
    Bp = ((B + 15) // 16) * 16                 # bf16 sublane-pack multiple

    sp = state if Bp == B else jnp.pad(state, ((0, Bp - B), (0, 0), (0, 0), (0, 0)))
    # conv-as-matmul operands, spatial-major rows (s*Bp + b), pre-cast to bf16:
    xh = jnp.transpose(sp, (2, 0, 1, 3)).reshape(H * Bp, C * W).astype(jnp.bfloat16)
    xw = jnp.transpose(sp, (3, 0, 1, 2)).reshape(W * Bp, C * H).astype(jnp.bfloat16)

    shapes, _, w_off, _, b_row, _ = _slab_layout(mid, C, H, W, action_dim)

    vmem = pl.BlockSpec(memory_space=pltpu.MemorySpace.VMEM)
    out = pl.pallas_call(
        partial(_fused_actor_kernel, B=B, Bp=Bp, H=H, W=W, mid=mid,
                action_dim=action_dim, shapes=shapes, w_off=w_off, b_row=b_row),
        in_specs=[vmem, vmem, vmem, vmem],
        out_specs=vmem,
        out_shape=jax.ShapeDtypeStruct((Bp, action_dim), jnp.float32),
    )(xh, xw, wslab, bslab)
    return out[:B]


# ---------------------------------------------------------------------------
# Deterministic synthetic parameters (shapes dictated by the module __init__).
# Weights are rounded to bf16-representable values so the bf16 kernel weights
# match the f32 reference weights exactly.
# ---------------------------------------------------------------------------
def init_params(key, mid, c, h, w, action_dim):
    ks = iter(jax.random.split(key, 32))

    def wgt(shape, scale):
        v = jax.random.normal(next(ks), shape, jnp.float32) * jnp.float32(scale)
        return v.astype(jnp.bfloat16).astype(jnp.float32)

    def bias(shape, scale=0.05):
        return jax.random.normal(next(ks), shape, jnp.float32) * jnp.float32(scale)

    p = {}
    # cnn_h: Conv2d(C, 2*mid, (1, W)) ; Conv2d(2*mid, mid, (1, 1))
    p["wh1"] = wgt((c * w, 2 * mid), (c * w) ** -0.5); p["bh1"] = bias((1, 2 * mid))
    p["wh2"] = wgt((2 * mid, mid), (2 * mid) ** -0.5); p["bh2"] = bias((1, mid))
    # cnn_w: Conv2d(C, 2*mid, (H, 1)) ; Conv2d(2*mid, mid, (1, 1))
    p["ww1"] = wgt((c * h, 2 * mid), (c * h) ** -0.5); p["bw1"] = bias((1, 2 * mid))
    p["ww2"] = wgt((2 * mid, mid), (2 * mid) ** -0.5); p["bw2"] = bias((1, mid))
    # post-flatten linears: Linear(H*mid, 4*mid) / Linear(W*mid, 4*mid)
    p["lh"] = wgt((h * mid, 4 * mid), (h * mid) ** -0.5); p["blh"] = bias((1, 4 * mid))
    p["lw"] = wgt((w * mid, 4 * mid), (w * mid) ** -0.5); p["blw"] = bias((1, 4 * mid))
    # Linear(4*mid, mid)
    p["w1"] = wgt((4 * mid, mid), (4 * mid) ** -0.5); p["b1"] = bias((1, mid))
    # DenseNet(mid): Linear(mid, mid), Linear(2*mid, 2*mid)
    p["d1w"] = wgt((mid, mid), mid ** -0.5); p["d1b"] = bias((1, mid))
    p["d2w"] = wgt((2 * mid, 2 * mid), (2 * mid) ** -0.5); p["d2b"] = bias((1, 2 * mid))
    # final Linear(4*mid, action_dim); layer_norm(std=0.1) -> small weights, zero bias
    p["wo"] = wgt((4 * mid, action_dim), 0.1 * (4 * mid) ** -0.5)
    p["bo"] = jnp.zeros((1, action_dim), jnp.float32)
    return p


# ---------------------------------------------------------------------------
# Pure-JAX reference (mirrors the PyTorch forward) for a correctness check.
# ---------------------------------------------------------------------------
def reference_forward(state, p):
    B, C, H, W = state.shape
    mid = p["d1w"].shape[0]
    xh = jnp.transpose(state, (0, 2, 1, 3)).reshape(B * H, C * W)
    xw = jnp.transpose(state, (0, 3, 1, 2)).reshape(B * W, C * H)

    def branch(x, w1, b1, w2, b2):
        h1 = x @ w1 + b1
        h1 = jnp.where(h1 > 0, h1, LEAKY_SLOPE * h1)
        return jnp.maximum(h1 @ w2 + b2, 0.0)

    fh = branch(xh, p["wh1"], p["bh1"], p["wh2"], p["bh2"]).reshape(B, H * mid)
    fw = branch(xw, p["ww1"], p["bw1"], p["ww2"], p["bw2"]).reshape(B, W * mid)
    bi = (fh @ p["lh"] + p["blh"]) + (fw @ p["lw"] + p["blw"])

    x1 = jnp.maximum(bi @ p["w1"] + p["b1"], 0.0)
    hsw = lambda v: v * jnp.clip(v + 3.0, 0.0, 6.0) / 6.0
    d1 = hsw(x1 @ p["d1w"] + p["d1b"])
    x2 = jnp.concatenate([x1, d1], axis=1)
    d2 = hsw(x2 @ p["d2w"] + p["d2b"])
    x3 = jnp.concatenate([x2, d2], axis=1)
    a = jnp.maximum(x3, 0.0) @ p["wo"] + p["bo"]
    return a * jnp.sum(a * a) ** -0.5


# ---------------------------------------------------------------------------
if __name__ == "__main__":
    B, C, H, W = 2, 4, 16, 16          # state_dim = (C, H, W), NCHW input
    MID, ACTION_DIM = 32, 8

    key = jax.random.PRNGKey(0)
    k_state, k_params = jax.random.split(key)
    state = jax.random.normal(k_state, (B, C, H, W), jnp.float32)
    params = init_params(k_params, MID, C, H, W, ACTION_DIM)
    wslab, bslab, mid, action_dim = pack_params(params)   # one-time host packing

    action = actor_biconv_forward(state, wslab, bslab, mid, action_dim)
    jax.block_until_ready(action)

    ref = reference_forward(state, params)
    assert action.shape == (B, ACTION_DIM)
    assert jnp.allclose(action, ref, atol=1e-2, rtol=1e-2), (action, ref)

    print("KERNEL_OK")
</pallas_src>

<mosaic_0001>
module attributes {stable_mosaic.version = 11 : i64} {
  func.func @_fused_actor_kernel(%arg0: memref<256x64xbf16, #tpu.memory_space<vmem>>, %arg1: memref<256x64xbf16, #tpu.memory_space<vmem>>, %arg2: memref<1632x128xbf16, #tpu.memory_space<vmem>>, %arg3: memref<16x128xf32, #tpu.memory_space<vmem>>, %arg4: memref<16x8xf32, #tpu.memory_space<vmem>>) attributes {dimension_semantics = [], scalar_prefetch = 0 : i64, scratch_operands = 0 : i64, tpu.core_type = #tpu.core_type<tc>} {
    %c0 = arith.constant 0 : index
    %c0_0 = arith.constant 0 : index
    %0 = vector.load %arg0[%c0, %c0_0] : memref<256x64xbf16, #tpu.memory_space<vmem>>, vector<256x64xbf16>
    %c0_1 = arith.constant 0 : index
    %c0_2 = arith.constant 0 : index
    %1 = vector.load %arg2[%c0_1, %c0_2] : memref<1632x128xbf16, #tpu.memory_space<vmem>>, vector<64x64xbf16>
    %cst = arith.constant dense<0.000000e+00> : vector<256x64xf32>
    %2 = tpu.matmul %0, %1, %cst {dimension_numbers = #tpu.dot_dimension_numbers<[1], [0], [0], [1], [0, 0, 1, 1], [], []>} : vector<256x64xbf16>, vector<64x64xbf16>, vector<256x64xf32> -> vector<256x64xf32>
    %c0_3 = arith.constant 0 : index
    %c0_4 = arith.constant 0 : index
    %3 = vector.load %arg3[%c0_3, %c0_4] : memref<16x128xf32, #tpu.memory_space<vmem>>, vector<1x64xf32>
    %4 = vector.broadcast %3 : vector<1x64xf32> to vector<256x64xf32>
    %5 = arith.addf %2, %4 : vector<256x64xf32>
    %cst_5 = arith.constant 0.00999999977 : f32
    %6 = vector.broadcast %cst_5 : f32 to vector<256x64xf32>
    %7 = arith.mulf %6, %5 : vector<256x64xf32>
    %8 = arith.maximumf %5, %7 : vector<256x64xf32>
    %9 = arith.truncf %8 : vector<256x64xf32> to vector<256x64xbf16>
    %c64 = arith.constant 64 : index
    %c0_6 = arith.constant 0 : index
    %10 = vector.load %arg2[%c64, %c0_6] : memref<1632x128xbf16, #tpu.memory_space<vmem>>, vector<64x32xbf16>
    %cst_7 = arith.constant dense<0.000000e+00> : vector<256x32xf32>
    %11 = tpu.matmul %9, %10, %cst_7 {dimension_numbers = #tpu.dot_dimension_numbers<[1], [0], [0], [1], [0, 0, 1, 1], [], []>} : vector<256x64xbf16>, vector<64x32xbf16>, vector<256x32xf32> -> vector<256x32xf32>
    %c1 = arith.constant 1 : index
    %c0_8 = arith.constant 0 : index
    %12 = vector.load %arg3[%c1, %c0_8] : memref<16x128xf32, #tpu.memory_space<vmem>>, vector<1x32xf32>
    %13 = vector.broadcast %12 : vector<1x32xf32> to vector<256x32xf32>
    %14 = arith.addf %11, %13 : vector<256x32xf32>
    %cst_9 = arith.constant 0.000000e+00 : f32
    %15 = vector.broadcast %cst_9 : f32 to vector<256x32xf32>
    %16 = arith.maximumf %14, %15 : vector<256x32xf32>
    %17 = arith.truncf %16 : vector<256x32xf32> to vector<256x32xbf16>
    %c0_10 = arith.constant 0 : index
    %c0_11 = arith.constant 0 : index
    %18 = vector.load %arg1[%c0_10, %c0_11] : memref<256x64xbf16, #tpu.memory_space<vmem>>, vector<256x64xbf16>
    %c128 = arith.constant 128 : index
    %c0_12 = arith.constant 0 : index
    %19 = vector.load %arg2[%c128, %c0_12] : memref<1632x128xbf16, #tpu.memory_space<vmem>>, vector<64x64xbf16>
    %cst_13 = arith.constant dense<0.000000e+00> : vector<256x64xf32>
    %20 = tpu.matmul %18, %19, %cst_13 {dimension_numbers = #tpu.dot_dimension_numbers<[1], [0], [0], [1], [0, 0, 1, 1], [], []>} : vector<256x64xbf16>, vector<64x64xbf16>, vector<256x64xf32> -> vector<256x64xf32>
    %c2 = arith.constant 2 : index
    %c0_14 = arith.constant 0 : index
    %21 = vector.load %arg3[%c2, %c0_14] : memref<16x128xf32, #tpu.memory_space<vmem>>, vector<1x64xf32>
    %22 = vector.broadcast %21 : vector<1x64xf32> to vector<256x64xf32>
    %23 = arith.addf %20, %22 : vector<256x64xf32>
    %cst_15 = arith.constant 0.00999999977 : f32
    %24 = vector.broadcast %cst_15 : f32 to vector<256x64xf32>
    %25 = arith.mulf %24, %23 : vector<256x64xf32>
    %26 = arith.maximumf %23, %25 : vector<256x64xf32>
    %27 = arith.truncf %26 : vector<256x64xf32> to vector<256x64xbf16>
    %c192 = arith.constant 192 : index
    %c0_16 = arith.constant 0 : index
    %28 = vector.load %arg2[%c192, %c0_16] : memref<1632x128xbf16, #tpu.memory_space<vmem>>, vector<64x32xbf16>
    %cst_17 = arith.constant dense<0.000000e+00> : vector<256x32xf32>
    %29 = tpu.matmul %27, %28, %cst_17 {dimension_numbers = #tpu.dot_dimension_numbers<[1], [0], [0], [1], [0, 0, 1, 1], [], []>} : vector<256x64xbf16>, vector<64x32xbf16>, vector<256x32xf32> -> vector<256x32xf32>
    %c3 = arith.constant 3 : index
    %c0_18 = arith.constant 0 : index
    %30 = vector.load %arg3[%c3, %c0_18] : memref<16x128xf32, #tpu.memory_space<vmem>>, vector<1x32xf32>
    %31 = vector.broadcast %30 : vector<1x32xf32> to vector<256x32xf32>
    %32 = arith.addf %29, %31 : vector<256x32xf32>
    %cst_19 = arith.constant 0.000000e+00 : f32
    %33 = vector.broadcast %cst_19 : f32 to vector<256x32xf32>
    %34 = arith.maximumf %32, %33 : vector<256x32xf32>
    %35 = arith.truncf %34 : vector<256x32xf32> to vector<256x32xbf16>
    %36 = vector.extract_strided_slice %17 {offsets = [0, 0], sizes = [16, 32], strides = [1, 1]} : vector<256x32xbf16> to vector<16x32xbf16>
    %37 = vector.extract_strided_slice %17 {offsets = [16, 0], sizes = [16, 32], strides = [1, 1]} : vector<256x32xbf16> to vector<16x32xbf16>
    %38 = vector.extract_strided_slice %17 {offsets = [32, 0], sizes = [16, 32], strides = [1, 1]} : vector<256x32xbf16> to vector<16x32xbf16>
    %39 = vector.extract_strided_slice %17 {offsets = [48, 0], sizes = [16, 32], strides = [1, 1]} : vector<256x32xbf16> to vector<16x32xbf16>
    %40 = vector.extract_strided_slice %17 {offsets = [64, 0], sizes = [16, 32], strides = [1, 1]} : vector<256x32xbf16> to vector<16x32xbf16>
    %41 = vector.extract_strided_slice %17 {offsets = [80, 0], sizes = [16, 32], strides = [1, 1]} : vector<256x32xbf16> to vector<16x32xbf16>
    %42 = vector.extract_strided_slice %17 {offsets = [96, 0], sizes = [16, 32], strides = [1, 1]} : vector<256x32xbf16> to vector<16x32xbf16>
    %43 = vector.extract_strided_slice %17 {offsets = [112, 0], sizes = [16, 32], strides = [1, 1]} : vector<256x32xbf16> to vector<16x32xbf16>
    %44 = vector.extract_strided_slice %17 {offsets = [128, 0], sizes = [16, 32], strides = [1, 1]} : vector<256x32xbf16> to vector<16x32xbf16>
    %45 = vector.extract_strided_slice %17 {offsets = [144, 0], sizes = [16, 32], strides = [1, 1]} : vector<256x32xbf16> to vector<16x32xbf16>
    %46 = vector.extract_strided_slice %17 {offsets = [160, 0], sizes = [16, 32], strides = [1, 1]} : vector<256x32xbf16> to vector<16x32xbf16>
    %47 = vector.extract_strided_slice %17 {offsets = [176, 0], sizes = [16, 32], strides = [1, 1]} : vector<256x32xbf16> to vector<16x32xbf16>
    %48 = vector.extract_strided_slice %17 {offsets = [192, 0], sizes = [16, 32], strides = [1, 1]} : vector<256x32xbf16> to vector<16x32xbf16>
    %49 = vector.extract_strided_slice %17 {offsets = [208, 0], sizes = [16, 32], strides = [1, 1]} : vector<256x32xbf16> to vector<16x32xbf16>
    %50 = vector.extract_strided_slice %17 {offsets = [224, 0], sizes = [16, 32], strides = [1, 1]} : vector<256x32xbf16> to vector<16x32xbf16>
    %51 = vector.extract_strided_slice %17 {offsets = [240, 0], sizes = [16, 32], strides = [1, 1]} : vector<256x32xbf16> to vector<16x32xbf16>
    %52 = tpu.concatenate %36, %37, %38, %39, %40, %41, %42, %43, %44, %45, %46, %47, %48, %49, %50, %51 in 1 : vector<16x32xbf16>, vector<16x32xbf16>, vector<16x32xbf16>, vector<16x32xbf16>, vector<16x32xbf16>, vector<16x32xbf16>, vector<16x32xbf16>, vector<16x32xbf16>, vector<16x32xbf16>, vector<16x32xbf16>, vector<16x32xbf16>, vector<16x32xbf16>, vector<16x32xbf16>, vector<16x32xbf16>, vector<16x32xbf16>, vector<16x32xbf16> -> vector<16x512xbf16>
    %c256 = arith.constant 256 : index
    %c0_20 = arith.constant 0 : index
    %53 = vector.load %arg2[%c256, %c0_20] : memref<1632x128xbf16, #tpu.memory_space<vmem>>, vector<512x128xbf16>
    %cst_21 = arith.constant dense<0.000000e+00> : vector<16x128xf32>
    %54 = tpu.matmul %52, %53, %cst_21 {dimension_numbers = #tpu.dot_dimension_numbers<[1], [0], [0], [1], [0, 0, 1, 1], [], []>} : vector<16x512xbf16>, vector<512x128xbf16>, vector<16x128xf32> -> vector<16x128xf32>
    %55 = vector.extract_strided_slice %35 {offsets = [0, 0], sizes = [16, 32], strides = [1, 1]} : vector<256x32xbf16> to vector<16x32xbf16>
    %56 = vector.extract_strided_slice %35 {offsets = [16, 0], sizes = [16, 32], strides = [1, 1]} : vector<256x32xbf16> to vector<16x32xbf16>
    %57 = vector.extract_strided_slice %35 {offsets = [32, 0], sizes = [16, 32], strides = [1, 1]} : vector<256x32xbf16> to vector<16x32xbf16>
    %58 = vector.extract_strided_slice %35 {offsets = [48, 0], sizes = [16, 32], strides = [1, 1]} : vector<256x32xbf16> to vector<16x32xbf16>
    %59 = vector.extract_strided_slice %35 {offsets = [64, 0], sizes = [16, 32], strides = [1, 1]} : vector<256x32xbf16> to vector<16x32xbf16>
    %60 = vector.extract_strided_slice %35 {offsets = [80, 0], sizes = [16, 32], strides = [1, 1]} : vector<256x32xbf16> to vector<16x32xbf16>
    %61 = vector.extract_strided_slice %35 {offsets = [96, 0], sizes = [16, 32], strides = [1, 1]} : vector<256x32xbf16> to vector<16x32xbf16>
    %62 = vector.extract_strided_slice %35 {offsets = [112, 0], sizes = [16, 32], strides = [1, 1]} : vector<256x32xbf16> to vector<16x32xbf16>
    %63 = vector.extract_strided_slice %35 {offsets = [128, 0], sizes = [16, 32], strides = [1, 1]} : vector<256x32xbf16> to vector<16x32xbf16>
    %64 = vector.extract_strided_slice %35 {offsets = [144, 0], sizes = [16, 32], strides = [1, 1]} : vector<256x32xbf16> to vector<16x32xbf16>
    %65 = vector.extract_strided_slice %35 {offsets = [160, 0], sizes = [16, 32], strides = [1, 1]} : vector<256x32xbf16> to vector<16x32xbf16>
    %66 = vector.extract_strided_slice %35 {offsets = [176, 0], sizes = [16, 32], strides = [1, 1]} : vector<256x32xbf16> to vector<16x32xbf16>
    %67 = vector.extract_strided_slice %35 {offsets = [192, 0], sizes = [16, 32], strides = [1, 1]} : vector<256x32xbf16> to vector<16x32xbf16>
    %68 = vector.extract_strided_slice %35 {offsets = [208, 0], sizes = [16, 32], strides = [1, 1]} : vector<256x32xbf16> to vector<16x32xbf16>
    %69 = vector.extract_strided_slice %35 {offsets = [224, 0], sizes = [16, 32], strides = [1, 1]} : vector<256x32xbf16> to vector<16x32xbf16>
    %70 = vector.extract_strided_slice %35 {offsets = [240, 0], sizes = [16, 32], strides = [1, 1]} : vector<256x32xbf16> to vector<16x32xbf16>
    %71 = tpu.concatenate %55, %56, %57, %58, %59, %60, %61, %62, %63, %64, %65, %66, %67, %68, %69, %70 in 1 : vector<16x32xbf16>, vector<16x32xbf16>, vector<16x32xbf16>, vector<16x32xbf16>, vector<16x32xbf16>, vector<16x32xbf16>, vector<16x32xbf16>, vector<16x32xbf16>, vector<16x32xbf16>, vector<16x32xbf16>, vector<16x32xbf16>, vector<16x32xbf16>, vector<16x32xbf16>, vector<16x32xbf16>, vector<16x32xbf16>, vector<16x32xbf16> -> vector<16x512xbf16>
    %c768 = arith.constant 768 : index
    %c0_22 = arith.constant 0 : index
    %72 = vector.load %arg2[%c768, %c0_22] : memref<1632x128xbf16, #tpu.memory_space<vmem>>, vector<512x128xbf16>
    %cst_23 = arith.constant dense<0.000000e+00> : vector<16x128xf32>
    %73 = tpu.matmul %71, %72, %cst_23 {dimension_numbers = #tpu.dot_dimension_numbers<[1], [0], [0], [1], [0, 0, 1, 1], [], []>} : vector<16x512xbf16>, vector<512x128xbf16>, vector<16x128xf32> -> vector<16x128xf32>
    %74 = arith.addf %54, %73 : vector<16x128xf32>
    %c4 = arith.constant 4 : index
    %c0_24 = arith.constant 0 : index
    %75 = vector.load %arg3[%c4, %c0_24] : memref<16x128xf32, #tpu.memory_space<vmem>>, vector<1x128xf32>
    %76 = vector.broadcast %75 : vector<1x128xf32> to vector<16x128xf32>
    %77 = arith.addf %74, %76 : vector<16x128xf32>
    %78 = arith.truncf %77 : vector<16x128xf32> to vector<16x128xbf16>
    %c1280 = arith.constant 1280 : index
    %c0_25 = arith.constant 0 : index
    %79 = vector.load %arg2[%c1280, %c0_25] : memref<1632x128xbf16, #tpu.memory_space<vmem>>, vector<128x32xbf16>
    %cst_26 = arith.constant dense<0.000000e+00> : vector<16x32xf32>
    %80 = tpu.matmul %78, %79, %cst_26 {dimension_numbers = #tpu.dot_dimension_numbers<[1], [0], [0], [1], [0, 0, 1, 1], [], []>} : vector<16x128xbf16>, vector<128x32xbf16>, vector<16x32xf32> -> vector<16x32xf32>
    %c5 = arith.constant 5 : index
    %c0_27 = arith.constant 0 : index
    %81 = vector.load %arg3[%c5, %c0_27] : memref<16x128xf32, #tpu.memory_space<vmem>>, vector<1x32xf32>
    %82 = vector.broadcast %81 : vector<1x32xf32> to vector<16x32xf32>
    %83 = arith.addf %80, %82 : vector<16x32xf32>
    %cst_28 = arith.constant 0.000000e+00 : f32
    %84 = vector.broadcast %cst_28 : f32 to vector<16x32xf32>
    %85 = arith.maximumf %83, %84 : vector<16x32xf32>
    %86 = arith.truncf %85 : vector<16x32xf32> to vector<16x32xbf16>
    %c1408 = arith.constant 1408 : index
    %c0_29 = arith.constant 0 : index
    %87 = vector.load %arg2[%c1408, %c0_29] : memref<1632x128xbf16, #tpu.memory_space<vmem>>, vector<32x32xbf16>
    %cst_30 = arith.constant dense<0.000000e+00> : vector<16x32xf32>
    %88 = tpu.matmul %86, %87, %cst_30 {dimension_numbers = #tpu.dot_dimension_numbers<[1], [0], [0], [1], [0, 0, 1, 1], [], []>} : vector<16x32xbf16>, vector<32x32xbf16>, vector<16x32xf32> -> vector<16x32xf32>
    %c6 = arith.constant 6 : index
    %c0_31 = arith.constant 0 : index
    %89 = vector.load %arg3[%c6, %c0_31] : memref<16x128xf32, #tpu.memory_space<vmem>>, vector<1x32xf32>
    %90 = vector.broadcast %89 : vector<1x32xf32> to vector<16x32xf32>
    %91 = arith.addf %88, %90 : vector<16x32xf32>
    %cst_32 = arith.constant 3.000000e+00 : f32
    %92 = vector.broadcast %cst_32 : f32 to vector<16x32xf32>
    %93 = arith.addf %91, %92 : vector<16x32xf32>
    %cst_33 = arith.constant 0.000000e+00 : f32
    %cst_34 = arith.constant 6.000000e+00 : f32
    %94 = vector.broadcast %cst_33 : f32 to vector<16x32xf32>
    %95 = arith.maximumf %94, %93 : vector<16x32xf32>
    %96 = vector.broadcast %cst_34 : f32 to vector<16x32xf32>
    %97 = arith.minimumf %96, %95 : vector<16x32xf32>
    %98 = arith.mulf %91, %97 : vector<16x32xf32>
    %cst_35 = arith.constant 0.166666672 : f32
    %99 = vector.broadcast %cst_35 : f32 to vector<16x32xf32>
    %100 = arith.mulf %98, %99 : vector<16x32xf32>
    %101 = tpu.concatenate %85, %100 in 1 : vector<16x32xf32>, vector<16x32xf32> -> vector<16x64xf32>
    %102 = arith.truncf %101 : vector<16x64xf32> to vector<16x64xbf16>
    %c1440 = arith.constant 1440 : index
    %c0_36 = arith.constant 0 : index
    %103 = vector.load %arg2[%c1440, %c0_36] : memref<1632x128xbf16, #tpu.memory_space<vmem>>, vector<64x64xbf16>
    %cst_37 = arith.constant dense<0.000000e+00> : vector<16x64xf32>
    %104 = tpu.matmul %102, %103, %cst_37 {dimension_numbers = #tpu.dot_dimension_numbers<[1], [0], [0], [1], [0, 0, 1, 1], [], []>} : vector<16x64xbf16>, vector<64x64xbf16>, vector<16x64xf32> -> vector<16x64xf32>
    %c7 = arith.constant 7 : index
    %c0_38 = arith.constant 0 : index
    %105 = vector.load %arg3[%c7, %c0_38] : memref<16x128xf32, #tpu.memory_space<vmem>>, vector<1x64xf32>
    %106 = vector.broadcast %105 : vector<1x64xf32> to vector<16x64xf32>
    %107 = arith.addf %104, %106 : vector<16x64xf32>
    %cst_39 = arith.constant 3.000000e+00 : f32
    %108 = vector.broadcast %cst_39 : f32 to vector<16x64xf32>
    %109 = arith.addf %107, %108 : vector<16x64xf32>
    %cst_40 = arith.constant 0.000000e+00 : f32
    %cst_41 = arith.constant 6.000000e+00 : f32
    %110 = vector.broadcast %cst_40 : f32 to vector<16x64xf32>
    %111 = arith.maximumf %110, %109 : vector<16x64xf32>
    %112 = vector.broadcast %cst_41 : f32 to vector<16x64xf32>
    %113 = arith.minimumf %112, %111 : vector<16x64xf32>
    %114 = arith.mulf %107, %113 : vector<16x64xf32>
    %cst_42 = arith.constant 0.166666672 : f32
    %115 = vector.broadcast %cst_42 : f32 to vector<16x64xf32>
    %116 = arith.mulf %114, %115 : vector<16x64xf32>
    %117 = tpu.concatenate %101, %116 in 1 : vector<16x64xf32>, vector<16x64xf32> -> vector<16x128xf32>
    %cst_43 = arith.constant 0.000000e+00 : f32
    %118 = vector.broadcast %cst_43 : f32 to vector<16x128xf32>
    %119 = arith.maximumf %117, %118 : vector<16x128xf32>
    %120 = arith.truncf %119 : vector<16x128xf32> to vector<16x128xbf16>
    %c1504 = arith.constant 1504 : index
    %c0_44 = arith.constant 0 : index
    %121 = vector.load %arg2[%c1504, %c0_44] : memref<1632x128xbf16, #tpu.memory_space<vmem>>, vector<128x8xbf16>
    %cst_45 = arith.constant dense<0.000000e+00> : vector<16x8xf32>
    %122 = tpu.matmul %120, %121, %cst_45 {dimension_numbers = #tpu.dot_dimension_numbers<[1], [0], [0], [1], [0, 0, 1, 1], [], []>} : vector<16x128xbf16>, vector<128x8xbf16>, vector<16x8xf32> -> vector<16x8xf32>
    %c8 = arith.constant 8 : index
    %c0_46 = arith.constant 0 : index
    %123 = vector.load %arg3[%c8, %c0_46] : memref<16x128xf32, #tpu.memory_space<vmem>>, vector<1x8xf32>
    %124 = vector.broadcast %123 : vector<1x8xf32> to vector<16x8xf32>
    %125 = arith.addf %122, %124 : vector<16x8xf32>
    %126 = tpu.iota {dimensions = array<i32: 0>} : vector<16x8xi32>
    %c2_i32 = arith.constant 2 : i32
    %127 = vector.broadcast %c2_i32 : i32 to vector<16x8xi32>
    %128 = arith.cmpi slt, %126, %127 : vector<16x8xi32>
    %129 = arith.mulf %125, %125 : vector<16x8xf32>
    %cst_47 = arith.constant 0.000000e+00 : f32
    %130 = vector.broadcast %cst_47 : f32 to vector<16x8xf32>
    %131 = arith.select %128, %129, %130 : vector<16x8xi1>, vector<16x8xf32>
    %132 = vector.shape_cast %131 : vector<16x8xf32> to vector<1x16x8xf32>
    %cst_48 = arith.constant dense<0.000000e+00> : vector<1xf32>
    %133 = vector.multi_reduction <add>, %132, %cst_48 [1, 2] : vector<1x16x8xf32> to vector<1xf32>
    %134 = vector.shape_cast %133 : vector<1xf32> to vector<1x1x1xf32>
    %135 = vector.extract %134[0, 0, 0] : f32 from vector<1x1x1xf32>
    %136 = math.rsqrt %135 : f32
    %137 = vector.broadcast %136 : f32 to vector<16x8xf32>
    %138 = arith.mulf %125, %137 : vector<16x8xf32>
    %c0_49 = arith.constant 0 : index
    %c0_50 = arith.constant 0 : index
    %139 = vector.load %arg4[%c0_49, %c0_50] : memref<16x8xf32, #tpu.memory_space<vmem>>, vector<16x8xf32>
    tpu.vector_store %arg4[%c0_49, %c0_50], %138 {strides = array<i32>} : memref<16x8xf32, #tpu.memory_space<vmem>>, vector<16x8xf32>,
    return
  }
}

</mosaic_0001>

<bundles_post_ra>
// kernel: actor_biconv_forward.1
= control target key start
LH: loop header
LB: loop body
LE: loop exit
PB: predicated region body
PF: predicated region fallthrough
CT: control target
= control target key end

     0   :  { %vm164_vm0 = vcmask 523264   ;;  %s3220_s13 = smov 32   ;;  %s3221_s14 = smov 64   ;;  %vm1319_vm1 = vcmask 261120   ;;  %vm1325_vm2 = vcmask 785408   ;;  %vm2420_vm4 = vcmask 64512   ;;  %s4001_s2 = inlined_call_operand.vmem [shape: bf16[1632,128], index: 2, kind: input, shape index: {}]   ;;  %s4002_s3 = inlined_call_operand.vmem [shape: f32[16,128], index: 3, kind: input, shape index: {}]   ;;  %s4003_s0 = inlined_call_operand.vmem [shape: bf16[256,64], index: 0, kind: input, shape index: {}]   ;;  %s4004_s1 = inlined_call_operand.vmem [shape: bf16[256,64], index: 1, kind: input, shape index: {}]   ;;  %s4005_s4 = inlined_call_operand.vmem [shape: f32[16,8], index: 4, kind: output, shape index: {}]  }
   0x1   :  { %v3075_v0 = vld [vmem:[%s4001_s2 + $0x18] sm:$0xff]  ;;  %v3074_v2 = vld [vmem:[%s4001_s2 + $0x10] sm:$0xff]  ;;  %v3073_v4 = vld [vmem:[%s4001_s2 + $0x8] sm:$0xff]  ;;  %s3222_s15 = smov 96  }
   0x2   :  { %v3099_v1 = vld [vmem:[%s4001_s2 + $0x58] sm:$0xff]  ;;  %217 = vmatpush.bf16.msra.mxu0 %v3075_v0  ;;  %v3098_v3 = vld [vmem:[%s4001_s2 + $0x50] sm:$0xff]  ;;  %v3097_v5 = vld [vmem:[%s4001_s2 + $0x48] sm:$0xff] }
   0x3   :  { %815 = vmatpush.bf16.msra.mxu2 %v3099_v1  ;;  %v3072_v6 = vld [vmem:[%s4001_s2] sm:$0xff]  ;;  %v3057_v10 = vld [vmem:[%s4003_s0 + $0x8] sm:$0xff]  ;;  %v3058_v12 = vld [vmem:[%s4003_s0 + $0x10] sm:$0xff] }
   0x4   :  { %v3096_v7 = vld [vmem:[%s4001_s2 + $0x40] sm:$0xff]  ;;  %v3081_v11 = vld [vmem:[%s4004_s1 + $0x8] sm:$0xff]  ;;  %v3082_v13 = vld [vmem:[%s4004_s1 + $0x10] sm:$0xff] }
   0x5   :  { %v3056_v8 = vld [vmem:[%s4003_s0] sm:$0xff]  ;;  %v3059_v14 = vld [vmem:[%s4003_s0 + $0x18] sm:$0xff]  ;;  %v3061_v18 = vld [vmem:[%s4003_s0 + $0x28] sm:$0xff] }
   0x6   :  { %218 = vmatpush.bf16.msra.mxu0 %v3074_v2  ;;  %v3080_v9 = vld [vmem:[%s4004_s1] sm:$0xff]  ;;  %v3083_v15 = vld [vmem:[%s4004_s1 + $0x18] sm:$0xff]  ;;  %v3085_v19 = vld [vmem:[%s4004_s1 + $0x28] sm:$0xff] }
   0x7   :  { %816 = vmatpush.bf16.msra.mxu2 %v3098_v3  ;;  %v3060_v16 = vld [vmem:[%s4003_s0 + $0x20] sm:$0xff]  ;;  %v3062_v20 = vld [vmem:[%s4003_s0 + $0x30] sm:$0xff]  ;;  %v3079_v22 = vld [vmem:[%s4001_s2 + $0x38] sm:$0xff] }
   0x8   :  { %v3084_v17 = vld [vmem:[%s4004_s1 + $0x20] sm:$0xff]  ;;  %v3086_v21 = vld [vmem:[%s4004_s1 + $0x30] sm:$0xff]  ;;  %468 = vmatpush.bf16.msra.mxu1 %v3079_v22  ;;  %v3103_v24 = vld [vmem:[%s4001_s2 + $0x78] sm:$0xff] }
   0x9   :  { %v3078_v23 = vld [vmem:[%s4001_s2 + $0x30] sm:$0xff]  ;;  %1066 = vmatpush.bf16.msra.mxu3 %v3103_v24  ;;  %v3077_v25 = vld [vmem:[%s4001_s2 + $0x28] sm:$0xff]  ;;  %v3076_v27 = vld [vmem:[%s4001_s2 + $0x20] sm:$0xff] }
   0xa   :  { %219 = vmatpush.bf16.msra.mxu0 %v3073_v4  ;;  %v3102_v26 = vld [vmem:[%s4001_s2 + $0x70] sm:$0xff]  ;;  %v3101_v28 = vld [vmem:[%s4001_s2 + $0x68] sm:$0xff]  ;;  %v3063_v29 = vld [vmem:[%s4003_s0 + $0x38] sm:$0xff] }
   0xb   :  { %817 = vmatpush.bf16.msra.mxu2 %v3097_v5  ;;  %v3087_v30 = vld [vmem:[%s4004_s1 + $0x38] sm:$0xff]  ;;  %v3100_v31 = vld [vmem:[%s4001_s2 + $0x60] sm:$0xff]  ;;  %v3065_v50 = vld [vmem:[%s4003_s0 + $0x48] sm:$0xff] }
   0xc   :  { %469 = vmatpush.bf16.msra.mxu1 %v3078_v23  ;;  %v3363_v32 = vld [vmem:[%s4002_s3] ss:$0 sm:$0xff]  ;;  %v3377_v39 = vld [vmem:[%s4002_s3 + $0x2] ss:$0 sm:$0xff]  ;;  %v3089_v51 = vld [vmem:[%s4004_s1 + $0x48] sm:$0xff] }
   0xd   :  { %1067 = vmatpush.bf16.msra.mxu3 %v3102_v26  ;;  %v3064_v33 = vld [vmem:[%s4003_s0 + $0x40] sm:$0xff]  ;;  %v3067_v26 = vld [vmem:[%s4003_s0 + $0x58] sm:$0xff] }
   0xe   :  { %220 = vmatpush.bf16.msra.mxu0 %v3072_v6  ;;  %v3088_v34 = vld [vmem:[%s4004_s1 + $0x40] sm:$0xff]  ;;  %v3066_v6 = vld [vmem:[%s4003_s0 + $0x50] sm:$0xff] }
   0xf   :  { %818 = vmatpush.bf16.msra.mxu2 %v3096_v7  ;;  %v3090_v7 = vld [vmem:[%s4004_s1 + $0x50] sm:$0xff] }
  0x10   :  { %470 = vmatpush.bf16.msra.mxu1 %v3077_v25 }
  0x11   :  { %2534 = vmatmul.msk.bf16.vlgmr.msra.gmra.mxu0 %vm164_vm0, %v3056_v8  ;;  %1068 = vmatpush.bf16.msra.mxu3 %v3101_v28 }
  0x12   :  { %2662 = vmatmul.msk.bf16.vlgmr.msra.gmra.mxu2 %vm164_vm0, %v3080_v9 }
  0x14   :  { %471 = vmatpush.bf16.msra.mxu1 %v3076_v27  ;;  %v3091_v27 = vld [vmem:[%s4004_s1 + $0x58] sm:$0xff] }
  0x15   :  { %1069 = vmatpush.bf16.msra.mxu3 %v3100_v31 }
  0x21   :  { %2535 = vmatmul.msk.bf16.gmra.mxu0 %vm164_vm0, %v3057_v10 }
  0x22   :  { %2663 = vmatmul.msk.bf16.gmra.mxu2 %vm164_vm0, %v3081_v11 }
  0x31   :  { %2536 = vmatmul.msk.bf16.gmra.mxu0 %vm164_vm0, %v3058_v12 }
  0x32   :  { %2664 = vmatmul.msk.bf16.gmra.mxu2 %vm164_vm0, %v3082_v13 }
  0x41   :  { %2537 = vmatmul.msk.bf16.gmra.mxu0 %vm164_vm0, %v3059_v14 }
  0x42   :  { %2665 = vmatmul.msk.bf16.gmra.mxu2 %vm164_vm0, %v3083_v15 }
  0x51   :  { %2538 = vmatmul.msk.bf16.gmra.mxu0 %vm164_vm0, %v3060_v16 }
  0x52   :  { %2666 = vmatmul.msk.bf16.gmra.mxu2 %vm164_vm0, %v3084_v17 }
  0x61   :  { %2539 = vmatmul.msk.bf16.gmra.mxu0 %vm164_vm0, %v3061_v18 }
  0x62   :  { %2667 = vmatmul.msk.bf16.gmra.mxu2 %vm164_vm0, %v3085_v19 }
  0x71   :  { %2540 = vmatmul.msk.bf16.gmra.mxu0 %vm164_vm0, %v3062_v20 }
  0x72   :  { %2668 = vmatmul.msk.bf16.gmra.mxu2 %vm164_vm0, %v3086_v21 }
  0x81   :  { %2541 = vmatmul.msk.bf16.gmra.mxu0 %vm164_vm0, %v3063_v29 }
  0x82   :  { %2669 = vmatmul.msk.bf16.gmra.mxu2 %vm164_vm0, %v3087_v30 }
  0x8e   :  { %v222_v35 = vpop.f32.mrf.mxu0 }
  0x8f   :  { %v223_v36 = vadd.f32 %v3363_v32, %v222_v35 }
  0x91   :  { %2542 = vmatmul.msk.bf16.gmra.mxu0 %vm164_vm0, %v3064_v33  ;;  %v302_v38 = vmul.f32 0.01, %v223_v36 }
  0x92   :  { %2670 = vmatmul.msk.bf16.gmra.mxu2 %vm164_vm0, %v3088_v34 }
  0x93   :  { %v334_v42 = vmax.f32 %v223_v36, %v302_v38 }
  0x95   :  { %v820_v37 = vpop.f32.mrf.mxu2 }
  0x96   :  { %v224_v40 = vpop.f32.mrf.mxu0  ;;  %v821_v43 = vadd.f32 %v3377_v39, %v820_v37 }
  0x97   :  { %v225_v41 = vadd.f32 %v3363_v32, %v224_v40 }
  0x98   :  { %v900_v47 = vmul.f32 0.01, %v821_v43 }
  0x99   :  { %v303_v44 = vmul.f32 0.01, %v225_v41 }
  0x9a   :  { %v932_v54 = vmax.f32 %v821_v43, %v900_v47 }
  0x9b   :  { %v335_v45 = vmax.f32 %v225_v41, %v303_v44 }
  0x9d   :  { %v822_v46 = vpop.f32.mrf.mxu2  ;;  %v366_v49 = vpack.c.bf16 %v335_v45, %v334_v42 }
  0x9e   :  { %v823_v48 = vadd.f32 %v3377_v39, %v822_v46  ;;  %v227_v52 = vpop.f32.mrf.mxu0 }
  0x9f   :  { %2566 = vmatmul.msk.bf16.vlgmr.msra.gmra.mxu1 %vm164_vm0, %v366_v49  ;;  %v228_v56 = vadd.f32 %v3363_v32, %v227_v52  ;;  %v3092_v49 = vld [vmem:[%s4004_s1 + $0x60] sm:$0xff] }
  0xa0   :  { %v901_v53 = vmul.f32 0.01, %v823_v48 }
  0xa1   :  { %2543 = vmatmul.msk.bf16.gmra.mxu0 %vm164_vm0, %v3065_v50  ;;  %v304_v59 = vmul.f32 0.01, %v228_v56 }
  0xa2   :  { %v933_v55 = vmax.f32 %v823_v48, %v901_v53  ;;  %2671 = vmatmul.msk.bf16.gmra.mxu2 %vm164_vm0, %v3089_v51  ;;  %v3068_v48 = vld [vmem:[%s4003_s0 + $0x60] sm:$0xff] }
  0xa3   :  { %v336_v62 = vmax.f32 %v228_v56, %v304_v59 }
  0xa4   :  { %v964_v57 = vpack.c.bf16 %v933_v55, %v932_v54 }
  0xa5   :  { %v825_v58 = vpop.f32.mrf.mxu2 }
  0xa6   :  { %2694 = vmatmul.msk.bf16.vlgmr.msra.gmra.mxu3 %vm164_vm0, %v964_v57  ;;  %v229_v60 = vpop.f32.mrf.mxu0  ;;  %v826_v63 = vadd.f32 %v3377_v39, %v825_v58 }
  0xa7   :  { %v230_v61 = vadd.f32 %v3363_v32, %v229_v60 }
  0xa8   :  { %v902_v3 = vmul.f32 0.01, %v826_v63 }
  0xa9   :  { %v305_v0 = vmul.f32 0.01, %v230_v61 }
  0xaa   :  { %v934_v10 = vmax.f32 %v826_v63, %v902_v3 }
  0xab   :  { %v337_v1 = vmax.f32 %v230_v61, %v305_v0 }
  0xad   :  { %v827_v2 = vpop.f32.mrf.mxu2  ;;  %v367_v5 = vpack.c.bf16 %v337_v1, %v336_v62 }
  0xae   :  { %v828_v4 = vadd.f32 %v3377_v39, %v827_v2  ;;  %v232_v8 = vpop.f32.mrf.mxu0 }
  0xaf   :  { %2567 = vmatmul.msk.bf16.gmra.mxu1 %vm164_vm0, %v367_v5  ;;  %v233_v12 = vadd.f32 %v3363_v32, %v232_v8  ;;  %v3093_v5 = vld [vmem:[%s4004_s1 + $0x68] sm:$0xff] }
  0xb0   :  { %v903_v9 = vmul.f32 0.01, %v828_v4 }
  0xb1   :  { %2544 = vmatmul.msk.bf16.gmra.mxu0 %vm164_vm0, %v3066_v6  ;;  %v306_v15 = vmul.f32 0.01, %v233_v12 }
  0xb2   :  { %v935_v11 = vmax.f32 %v828_v4, %v903_v9  ;;  %2672 = vmatmul.msk.bf16.gmra.mxu2 %vm164_vm0, %v3090_v7  ;;  %v3069_v4 = vld [vmem:[%s4003_s0 + $0x68] sm:$0xff] }
  0xb3   :  { %v338_v18 = vmax.f32 %v233_v12, %v306_v15 }
  0xb4   :  { %v965_v13 = vpack.c.bf16 %v935_v11, %v934_v10 }
  0xb5   :  { %v830_v14 = vpop.f32.mrf.mxu2 }
  0xb6   :  { %2695 = vmatmul.msk.bf16.gmra.mxu3 %vm164_vm0, %v965_v13  ;;  %v234_v16 = vpop.f32.mrf.mxu0  ;;  %v831_v19 = vadd.f32 %v3377_v39, %v830_v14 }
  0xb7   :  { %v235_v17 = vadd.f32 %v3363_v32, %v234_v16 }
  0xb8   :  { %v904_v23 = vmul.f32 0.01, %v831_v19 }
  0xb9   :  { %v307_v20 = vmul.f32 0.01, %v235_v17 }
  0xba   :  { %v936_v30 = vmax.f32 %v831_v19, %v904_v23 }
  0xbb   :  { %v339_v21 = vmax.f32 %v235_v17, %v307_v20 }
  0xbd   :  { %v832_v22 = vpop.f32.mrf.mxu2  ;;  %v368_v25 = vpack.c.bf16 %v339_v21, %v338_v18 }
  0xbe   :  { %v833_v24 = vadd.f32 %v3377_v39, %v832_v22  ;;  %v237_v28 = vpop.f32.mrf.mxu0 }
  0xbf   :  { %2568 = vmatmul.msk.bf16.gmra.mxu1 %vm164_vm0, %v368_v25  ;;  %v238_v33 = vadd.f32 %v3363_v32, %v237_v28  ;;  %v3070_v25 = vld [vmem:[%s4003_s0 + $0x70] sm:$0xff] }
  0xc0   :  { %v905_v29 = vmul.f32 0.01, %v833_v24 }
  0xc1   :  { %2545 = vmatmul.msk.bf16.gmra.mxu0 %vm164_vm0, %v3067_v26  ;;  %v308_v36 = vmul.f32 0.01, %v238_v33 }
  0xc2   :  { %v937_v31 = vmax.f32 %v833_v24, %v905_v29  ;;  %2673 = vmatmul.msk.bf16.gmra.mxu2 %vm164_vm0, %v3091_v27  ;;  %v3094_v24 = vld [vmem:[%s4004_s1 + $0x70] sm:$0xff] }
  0xc3   :  { %v340_v40 = vmax.f32 %v238_v33, %v308_v36 }
  0xc4   :  { %v966_v34 = vpack.c.bf16 %v937_v31, %v936_v30 }
  0xc5   :  { %v835_v35 = vpop.f32.mrf.mxu2 }
  0xc6   :  { %2696 = vmatmul.msk.bf16.gmra.mxu3 %vm164_vm0, %v966_v34  ;;  %v239_v37 = vpop.f32.mrf.mxu0  ;;  %v836_v41 = vadd.f32 %v3377_v39, %v835_v35 }
  0xc7   :  { %v240_v38 = vadd.f32 %v3363_v32, %v239_v37 }
  0xc8   :  { %v906_v45 = vmul.f32 0.01, %v836_v41 }
  0xc9   :  { %v309_v42 = vmul.f32 0.01, %v240_v38 }
  0xca   :  { %v938_v52 = vmax.f32 %v836_v41, %v906_v45 }
  0xcb   :  { %v341_v43 = vmax.f32 %v240_v38, %v309_v42 }
  0xcd   :  { %v837_v44 = vpop.f32.mrf.mxu2  ;;  %v369_v47 = vpack.c.bf16 %v341_v43, %v340_v40 }
  0xce   :  { %v838_v46 = vadd.f32 %v3377_v39, %v837_v44  ;;  %v242_v50 = vpop.f32.mrf.mxu0 }
  0xcf   :  { %2569 = vmatmul.msk.bf16.gmra.mxu1 %vm164_vm0, %v369_v47  ;;  %v243_v54 = vadd.f32 %v3363_v32, %v242_v50  ;;  %v3071_v47 = vld [vmem:[%s4003_s0 + $0x78] sm:$0xff] }
  0xd0   :  { %v907_v51 = vmul.f32 0.01, %v838_v46 }
  0xd1   :  { %2546 = vmatmul.msk.bf16.gmra.mxu0 %vm164_vm0, %v3068_v48  ;;  %v310_v57 = vmul.f32 0.01, %v243_v54 }
  0xd2   :  { %v939_v53 = vmax.f32 %v838_v46, %v907_v51  ;;  %2674 = vmatmul.msk.bf16.gmra.mxu2 %vm164_vm0, %v3092_v49  ;;  %v3095_v46 = vld [vmem:[%s4004_s1 + $0x78] sm:$0xff] }
  0xd3   :  { %v342_v60 = vmax.f32 %v243_v54, %v310_v57 }
  0xd4   :  { %v967_v55 = vpack.c.bf16 %v939_v53, %v938_v52 }
  0xd5   :  { %v840_v56 = vpop.f32.mrf.mxu2 }
  0xd6   :  { %2697 = vmatmul.msk.bf16.gmra.mxu3 %vm164_vm0, %v967_v55  ;;  %v244_v58 = vpop.f32.mrf.mxu0  ;;  %v841_v61 = vadd.f32 %v3377_v39, %v840_v56 }
  0xd7   :  { %v245_v59 = vadd.f32 %v3363_v32, %v244_v58 }
  0xd8   :  { %v908_v1 = vmul.f32 0.01, %v841_v61 }
  0xd9   :  { %v311_v62 = vmul.f32 0.01, %v245_v59 }
  0xda   :  { %v940_v8 = vmax.f32 %v841_v61, %v908_v1 }
  0xdb   :  { %v343_v63 = vmax.f32 %v245_v59, %v311_v62 }
  0xdd   :  { %v842_v0 = vpop.f32.mrf.mxu2  ;;  %v370_v3 = vpack.c.bf16 %v343_v63, %v342_v60 }
  0xde   :  { %v843_v2 = vadd.f32 %v3377_v39, %v842_v0  ;;  %v247_v6 = vpop.f32.mrf.mxu0 }
  0xdf   :  { %2570 = vmatmul.msk.bf16.gmra.mxu1 %vm164_vm0, %v370_v3  ;;  %v248_v10 = vadd.f32 %v3363_v32, %v247_v6 }
  0xe0   :  { %v909_v7 = vmul.f32 0.01, %v843_v2 }
  0xe1   :  { %2547 = vmatmul.msk.bf16.gmra.mxu0 %vm164_vm0, %v3069_v4  ;;  %v312_v13 = vmul.f32 0.01, %v248_v10 }
  0xe2   :  { %v941_v9 = vmax.f32 %v843_v2, %v909_v7  ;;  %2675 = vmatmul.msk.bf16.gmra.mxu2 %vm164_vm0, %v3093_v5 }
  0xe3   :  { %v344_v16 = vmax.f32 %v248_v10, %v312_v13 }
  0xe4   :  { %v968_v11 = vpack.c.bf16 %v941_v9, %v940_v8 }
  0xe5   :  { %v845_v12 = vpop.f32.mrf.mxu2 }
  0xe6   :  { %2698 = vmatmul.msk.bf16.gmra.mxu3 %vm164_vm0, %v968_v11  ;;  %v249_v14 = vpop.f32.mrf.mxu0  ;;  %v846_v17 = vadd.f32 %v3377_v39, %v845_v12 }
  0xe7   :  { %v250_v15 = vadd.f32 %v3363_v32, %v249_v14 }
  0xe8   :  { %v910_v21 = vmul.f32 0.01, %v846_v17 }
  0xe9   :  { %v313_v18 = vmul.f32 0.01, %v250_v15 }
  0xea   :  { %v942_v28 = vmax.f32 %v846_v17, %v910_v21 }
  0xeb   :  { %v345_v19 = vmax.f32 %v250_v15, %v313_v18  ;;  %v3488_v15 = vld [vmem:[%s4002_s3 + $0x1] ss:$0 sm:$0xff] }
  0xed   :  { %v847_v20 = vpop.f32.mrf.mxu2  ;;  %v371_v23 = vpack.c.bf16 %v345_v19, %v344_v16 }
  0xee   :  { %v848_v22 = vadd.f32 %v3377_v39, %v847_v20  ;;  %v252_v26 = vpop.f32.mrf.mxu0 }
  0xef   :  { %2571 = vmatmul.msk.bf16.gmra.mxu1 %vm164_vm0, %v371_v23  ;;  %v253_v30 = vadd.f32 %v3363_v32, %v252_v26 }
  0xf0   :  { %v911_v27 = vmul.f32 0.01, %v848_v22 }
  0xf1   :  { %2548 = vmatmul.msk.bf16.gmra.mxu0 %vm164_vm0, %v3070_v25  ;;  %v314_v34 = vmul.f32 0.01, %v253_v30 }
  0xf2   :  { %v943_v29 = vmax.f32 %v848_v22, %v911_v27  ;;  %2676 = vmatmul.msk.bf16.gmra.mxu2 %vm164_vm0, %v3094_v24 }
  0xf3   :  { %v346_v37 = vmax.f32 %v253_v30, %v314_v34 }
  0xf4   :  { %v969_v31 = vpack.c.bf16 %v943_v29, %v942_v28 }
  0xf5   :  { %v850_v33 = vpop.f32.mrf.mxu2 }
  0xf6   :  { %2699 = vmatmul.msk.bf16.gmra.mxu3 %vm164_vm0, %v969_v31  ;;  %v254_v35 = vpop.f32.mrf.mxu0  ;;  %v851_v38 = vadd.f32 %v3377_v39, %v850_v33 }
  0xf7   :  { %v255_v36 = vadd.f32 %v3363_v32, %v254_v35 }
  0xf8   :  { %v912_v43 = vmul.f32 0.01, %v851_v38 }
  0xf9   :  { %v315_v40 = vmul.f32 0.01, %v255_v36 }
  0xfa   :  { %v944_v50 = vmax.f32 %v851_v38, %v912_v43 }
  0xfb   :  { %v347_v41 = vmax.f32 %v255_v36, %v315_v40  ;;  %v3500_v40 = vld [vmem:[%s4002_s3 + $0x3] ss:$0 sm:$0xff] }
  0xfd   :  { %v852_v42 = vpop.f32.mrf.mxu2  ;;  %v372_v45 = vpack.c.bf16 %v347_v41, %v346_v37 }
  0xfe   :  { %v853_v44 = vadd.f32 %v3377_v39, %v852_v42  ;;  %v257_v48 = vpop.f32.mrf.mxu0 }
  0xff   :  { %2572 = vmatmul.msk.bf16.gmra.mxu1 %vm164_vm0, %v372_v45  ;;  %v258_v52 = vadd.f32 %v3363_v32, %v257_v48 }
 0x100   :  { %v913_v49 = vmul.f32 0.01, %v853_v44 }
 0x101   :  { %2549 = vmatmul.msk.bf16.gmra.mxu0 %vm164_vm0, %v3071_v47  ;;  %v316_v55 = vmul.f32 0.01, %v258_v52 }
 0x102   :  { %v945_v51 = vmax.f32 %v853_v44, %v913_v49  ;;  %2677 = vmatmul.msk.bf16.gmra.mxu2 %vm164_vm0, %v3095_v46 }
 0x103   :  { %v348_v58 = vmax.f32 %v258_v52, %v316_v55 }
 0x104   :  { %v970_v53 = vpack.c.bf16 %v945_v51, %v944_v50 }
 0x105   :  { %v855_v54 = vpop.f32.mrf.mxu2 }
 0x106   :  { %2700 = vmatmul.msk.bf16.gmra.mxu3 %vm164_vm0, %v970_v53  ;;  %v259_v56 = vpop.f32.mrf.mxu0  ;;  %v856_v59 = vadd.f32 %v3377_v39, %v855_v54 }
 0x107   :  { %v260_v57 = vadd.f32 %v3363_v32, %v259_v56 }
 0x108   :  { %v914_v63 = vmul.f32 0.01, %v856_v59 }
 0x109   :  { %v317_v60 = vmul.f32 0.01, %v260_v57 }
 0x10a   :  { %v946_v4 = vmax.f32 %v856_v59, %v914_v63 }
 0x10b   :  { %v349_v61 = vmax.f32 %v260_v57, %v317_v60 }
 0x10d   :  { %v857_v62 = vpop.f32.mrf.mxu2  ;;  %v373_v1 = vpack.c.bf16 %v349_v61, %v348_v58 }
 0x10e   :  { %v858_v0 = vadd.f32 %v3377_v39, %v857_v62  ;;  %v262_v2 = vpop.f32.mrf.mxu0 }
 0x10f   :  { %2573 = vmatmul.msk.bf16.gmra.mxu1 %vm164_vm0, %v373_v1  ;;  %v263_v6 = vadd.f32 %v3363_v32, %v262_v2 }
 0x110   :  { %v915_v3 = vmul.f32 0.01, %v858_v0 }
 0x111   :  { %v318_v9 = vmul.f32 0.01, %v263_v6 }
 0x112   :  { %v947_v5 = vmax.f32 %v858_v0, %v915_v3 }
 0x113   :  { %v350_v12 = vmax.f32 %v263_v6, %v318_v9 }
 0x114   :  { %v971_v7 = vpack.c.bf16 %v947_v5, %v946_v4 }
 0x115   :  { %v860_v8 = vpop.f32.mrf.mxu2 }
 0x116   :  { %2701 = vmatmul.msk.bf16.gmra.mxu3 %vm164_vm0, %v971_v7  ;;  %v264_v10 = vpop.f32.mrf.mxu0  ;;  %v861_v13 = vadd.f32 %v3377_v39, %v860_v8 }
 0x117   :  { %v265_v11 = vadd.f32 %v3363_v32, %v264_v10 }
 0x118   :  { %v916_v19 = vmul.f32 0.01, %v861_v13 }
 0x119   :  { %v319_v14 = vmul.f32 0.01, %v265_v11 }
 0x11a   :  { %v948_v25 = vmax.f32 %v861_v13, %v916_v19 }
 0x11b   :  { %v351_v16 = vmax.f32 %v265_v11, %v319_v14 }
 0x11c   :  { %v473_v17 = vpop.f32.mrf.mxu1 }
 0x11d   :  { %v862_v18 = vpop.f32.mrf.mxu2  ;;  %v474_v20 = vadd.f32 %v3488_v15, %v473_v17  ;;  %v374_v22 = vpack.c.bf16 %v351_v16, %v350_v12 }
 0x11e   :  { %v863_v21 = vadd.f32 %v3377_v39, %v862_v18  ;;  %v267_v23 = vpop.f32.mrf.mxu0 }
 0x11f   :  { %2574 = vmatmul.msk.bf16.gmra.mxu1 %vm164_vm0, %v374_v22  ;;  %v553_v26 = vmax.f32 %v474_v20, 0.0  ;;  %v268_v28 = vadd.f32 %v3363_v32, %v267_v23 }
 0x120   :  { %v917_v24 = vmul.f32 0.01, %v863_v21 }
 0x121   :  { %v585_v33 = vpack.c.bf16 %v553_v26, %v553_v26  ;;  %v320_v35 = vmul.f32 0.01, %v268_v28 }
 0x122   :  { %v949_v27 = vmax.f32 %v863_v21, %v917_v24 }
 0x123   :  { %v1217_v42 = vunpack.c.l.b16 %v585_v33  ;;  %v352_v46 = vmax.f32 %v268_v28, %v320_v35 }
 0x124   :  { %v972_v29 = vpack.c.bf16 %v949_v27, %v948_v25  ;;  %v475_v30 = vpop.f32.mrf.mxu1 }
 0x125   :  { %v865_v31 = vpop.f32.mrf.mxu2  ;;  %v476_v34 = vadd.f32 %v3488_v15, %v475_v30 }
 0x126   :  { %2702 = vmatmul.msk.bf16.gmra.mxu3 %vm164_vm0, %v972_v29  ;;  %v269_v36 = vpop.f32.mrf.mxu0  ;;  %v866_v44 = vadd.f32 %v3377_v39, %v865_v31 }
 0x127   :  { %v554_v37 = vmax.f32 %v476_v34, 0.0  ;;  %v270_v38 = vadd.f32 %v3363_v32, %v269_v36 }
 0x128   :  { %v918_v53 = vmul.f32 0.01, %v866_v44 }
 0x129   :  { %v1071_v41 = vpop.f32.mrf.mxu3  ;;  %v586_v43 = vpack.c.bf16 %v554_v37, %v554_v37  ;;  %v321_v45 = vmul.f32 0.01, %v270_v38 }
 0x12a   :  { %v1072_v49 = vadd.f32 %v3500_v40, %v1071_v41  ;;  %v950_v63 = vmax.f32 %v866_v44, %v918_v53 }
 0x12b   :  { %v1218_v47 = vunpack.c.l.b16 %v586_v43  ;;  %v353_v48 = vmax.f32 %v270_v38, %v321_v45 }
 0x12c   :  { %v478_v50 = vpop.f32.mrf.mxu1  ;;  %v1151_v58 = vmax.f32 %v1072_v49, 0.0 }
 0x12d   :  { %v867_v51 = vpop.f32.mrf.mxu2  ;;  %v3504_v52 = vpack.c.b16 %v1218_v47, %v1217_v42  ;;  %v479_v54 = vadd.f32 %v3488_v15, %v478_v50  ;;  %v375_v57 = vpack.c.bf16 %v353_v48, %v352_v46 }
 0x12e   :  { %v868_v55 = vadd.f32 %v3377_v39, %v867_v51  ;;  %v272_v56 = vpop.f32.mrf.mxu0  ;;  %v1183_v2 = vpack.c.bf16 %v1151_v58, %v1151_v58 }
 0x12f   :  { %v555_v60 = vmax.f32 %v479_v54, 0.0  ;;  %v273_v61 = vadd.f32 %v3363_v32, %v272_v56  ;;  %2575 = vmatmul.msk.bf16.gmra.mxu1 %vm164_vm0, %v375_v57 }
 0x130   :  { %v919_v59 = vmul.f32 0.01, %v868_v55  ;;  %v1419_v12 = vunpack.c.l.b16 %v1183_v2 }
 0x131   :  { %v1073_v62 = vpop.f32.mrf.mxu3  ;;  %v587_v5 = vpack.c.bf16 %v555_v60, %v555_v60  ;;  %v322_v6 = vmul.f32 0.01, %v273_v61 }
 0x132   :  { %v951_v0 = vmax.f32 %v868_v55, %v919_v59  ;;  %v1074_v1 = vadd.f32 %v3500_v40, %v1073_v62 }
 0x133   :  { %v1222_v17 = vunpack.c.l.b16 %v587_v5  ;;  %v354_v18 = vmax.f32 %v273_v61, %v322_v6 }
 0x134   :  { %v1152_v3 = vmax.f32 %v1074_v1, 0.0  ;;  %v973_v4 = vpack.c.bf16 %v951_v0, %v950_v63  ;;  %v480_v7 = vpop.f32.mrf.mxu1 }
 0x135   :  { %v870_v8 = vpop.f32.mrf.mxu2  ;;  %v481_v10 = vadd.f32 %v3488_v15, %v480_v7 }
 0x136   :  { %v1184_v9 = vpack.c.bf16 %v1152_v3, %v1152_v3  ;;  %2703 = vmatmul.msk.bf16.gmra.mxu3 %vm164_vm0, %v973_v4  ;;  %v274_v11 = vpop.f32.mrf.mxu0  ;;  %v871_v22 = vadd.f32 %v3377_v39, %v870_v8 }
 0x137   :  { %v556_v14 = vmax.f32 %v481_v10, 0.0  ;;  %v275_v16 = vadd.f32 %v3363_v32, %v274_v11 }
 0x138   :  { %v1420_v13 = vunpack.c.l.b16 %v1184_v9  ;;  %v920_v29 = vmul.f32 0.01, %v871_v22 }
 0x139   :  { %v1076_v19 = vpop.f32.mrf.mxu3  ;;  %v588_v21 = vpack.c.bf16 %v556_v14, %v556_v14  ;;  %v323_v23 = vmul.f32 0.01, %v275_v16 }
 0x13a   :  { %v3514_v20 = vpack.c.b16 %v1420_v13, %v1419_v12  ;;  %v1077_v26 = vadd.f32 %v3500_v40, %v1076_v19  ;;  %v952_v41 = vmax.f32 %v871_v22, %v920_v29 }
 0x13b   :  { %v1223_v24 = vunpack.c.l.b16 %v588_v21  ;;  %v355_v25 = vmax.f32 %v275_v16, %v323_v23 }
 0x13c   :  { %v483_v27 = vpop.f32.mrf.mxu1  ;;  %v1153_v37 = vmax.f32 %v1077_v26, 0.0 }
 0x13d   :  { %v872_v28 = vpop.f32.mrf.mxu2  ;;  %v376_v31 = vpack.c.bf16 %v355_v25, %v354_v18  ;;  %v1224_v33 = vpack.c.b16 %v1223_v24, %v1222_v17  ;;  %v484_v34 = vadd.f32 %v3488_v15, %v483_v27 }
 0x13e   :  { %v873_v30 = vadd.f32 %v3377_v39, %v872_v28  ;;  %v277_v35 = vpop.f32.mrf.mxu0  ;;  %v1185_v48 = vpack.c.bf16 %v1153_v37, %v1153_v37 }
 0x13f   :  { %1225 = vrot.lane.b32.xlu2 %v1224_v33, %s3220_s13  ;;  %2576 = vmatmul.msk.bf16.gmra.mxu1 %vm164_vm0, %v376_v31  ;;  %v278_v43 = vadd.f32 %v3363_v32, %v277_v35  ;;  %v557_v45 = vmax.f32 %v484_v34, 0.0 }
 0x140   :  { %v921_v36 = vmul.f32 0.01, %v873_v30  ;;  %v1424_v60 = vunpack.c.l.b16 %v1185_v48 }
 0x141   :  { %v1078_v38 = vpop.f32.mrf.mxu3  ;;  %v324_v51 = vmul.f32 0.01, %v278_v43  ;;  %v589_v55 = vpack.c.bf16 %v557_v45, %v557_v45 }
 0x142   :  { %v953_v42 = vmax.f32 %v873_v30, %v921_v36  ;;  %v1079_v44 = vadd.f32 %v3500_v40, %v1078_v38 }
 0x143   :  { %v356_v62 = vmax.f32 %v278_v43, %v324_v51  ;;  %v1229_v2 = vunpack.c.l.b16 %v589_v55 }
 0x144   :  { %v1154_v46 = vmax.f32 %v1079_v44, 0.0  ;;  %v974_v47 = vpack.c.bf16 %v953_v42, %v952_v41  ;;  %v485_v49 = vpop.f32.mrf.mxu1 }
 0x145   :  { %v875_v50 = vpop.f32.mrf.mxu2  ;;  %v486_v54 = vadd.f32 %v3488_v15, %v485_v49 }
 0x146   :  { %v1186_v53 = vpack.c.bf16 %v1154_v46, %v1154_v46  ;;  %2704 = vmatmul.msk.bf16.gmra.mxu3 %vm164_vm0, %v974_v47  ;;  %v279_v56 = vpop.f32.mrf.mxu0  ;;  %v876_v0 = vadd.f32 %v3377_v39, %v875_v50 }
 0x147   :  { %v558_v58 = vmax.f32 %v486_v54, 0.0  ;;  %v280_v59 = vadd.f32 %v3363_v32, %v279_v56 }
 0x148   :  { %v1425_v57 = vunpack.c.l.b16 %v1186_v53  ;;  %v922_v9 = vmul.f32 0.01, %v876_v0 }
 0x149   :  { %v1081_v61 = vpop.f32.mrf.mxu3  ;;  %v590_v63 = vpack.c.bf16 %v558_v58, %v558_v58  ;;  %v325_v1 = vmul.f32 0.01, %v280_v59 }
 0x14a   :  { %v1426_v3 = vpack.c.b16 %v1425_v57, %v1424_v60  ;;  %v1082_v6 = vadd.f32 %v3500_v40, %v1081_v61  ;;  %v954_v19 = vmax.f32 %v876_v0, %v922_v9 }
 0x14b   :  { %v1230_v4 = vunpack.c.l.b16 %v590_v63  ;;  %v357_v5 = vmax.f32 %v280_v59, %v325_v1 }
 0x14c   :  { %1427 = vrot.lane.b32.xlu1 %v1426_v3, %s3220_s13  ;;  %v488_v7 = vpop.f32.mrf.mxu1  ;;  %v1155_v17 = vmax.f32 %v1082_v6, 0.0 }
 0x14d   :  { %v877_v8 = vpop.f32.mrf.mxu2  ;;  %v377_v11 = vpack.c.bf16 %v357_v5, %v356_v62  ;;  %v489_v12 = vadd.f32 %v3488_v15, %v488_v7  ;;  %v3532_v14 = vpack.c.b16 %v1230_v4, %v1229_v2 }
 0x14e   :  { %v878_v10 = vadd.f32 %v3377_v39, %v877_v8  ;;  %v282_v13 = vpop.f32.mrf.mxu0  ;;  %v1187_v27 = vpack.c.bf16 %v1155_v17, %v1155_v17 }
 0x14f   :  { %2577 = vmatmul.msk.bf16.gmra.mxu1 %vm164_vm0, %v377_v11  ;;  %v283_v22 = vadd.f32 %v3363_v32, %v282_v13  ;;  %v559_v24 = vmax.f32 %v489_v12, 0.0 }
 0x150   :  { %v923_v16 = vmul.f32 0.01, %v878_v10  ;;  %v1431_v41 = vunpack.c.l.b16 %v1187_v27 }
 0x151   :  { %v1083_v18 = vpop.f32.mrf.mxu3  ;;  %v326_v30 = vmul.f32 0.01, %v283_v22  ;;  %v591_v34 = vpack.c.bf16 %v559_v24, %v559_v24 }
 0x152   :  { %v955_v21 = vmax.f32 %v878_v10, %v923_v16  ;;  %v1084_v23 = vadd.f32 %v3500_v40, %v1083_v18 }
 0x153   :  { %v358_v43 = vmax.f32 %v283_v22, %v326_v30  ;;  %v1236_v47 = vunpack.c.l.b16 %v591_v34 }
 0x154   :  { %v1156_v25 = vmax.f32 %v1084_v23, 0.0  ;;  %v975_v26 = vpack.c.bf16 %v955_v21, %v954_v19  ;;  %v490_v28 = vpop.f32.mrf.mxu1 }
 0x155   :  { %v880_v29 = vpop.f32.mrf.mxu2  ;;  %v491_v33 = vadd.f32 %v3488_v15, %v490_v28 }
 0x156   :  { %v1188_v31 = vpack.c.bf16 %v1156_v25, %v1156_v25  ;;  %2705 = vmatmul.msk.bf16.gmra.mxu3 %vm164_vm0, %v975_v26  ;;  %v284_v35 = vpop.f32.mrf.mxu0  ;;  %v881_v45 = vadd.f32 %v3377_v39, %v880_v29 }
 0x157   :  { %v560_v37 = vmax.f32 %v491_v33, 0.0  ;;  %v285_v38 = vadd.f32 %v3363_v32, %v284_v35 }
 0x158   :  { %v1432_v36 = vunpack.c.l.b16 %v1188_v31  ;;  %v924_v55 = vmul.f32 0.01, %v881_v45 }
 0x159   :  { %v1086_v42 = vpop.f32.mrf.mxu3  ;;  %v592_v44 = vpack.c.bf16 %v560_v37, %v560_v37  ;;  %v327_v46 = vmul.f32 0.01, %v285_v38 }
 0x15a   :  { %v1433_v48 = vpack.c.b16 %v1432_v36, %v1431_v41  ;;  %v1087_v51 = vadd.f32 %v3500_v40, %v1086_v42  ;;  %v956_v63 = vmax.f32 %v881_v45, %v924_v55 }
 0x15b   :  { %v1237_v49 = vunpack.c.l.b16 %v592_v44  ;;  %v359_v50 = vmax.f32 %v285_v38, %v327_v46 }
 0x15c   :  { %1434 = vrot.lane.b32.xlu2 %v1433_v48, %s3221_s14  ;;  %v3543_v53 = vpop.f32.mrf.mxu1  ;;  %v1157_v61 = vmax.f32 %v1087_v51, 0.0 }
 0x15d   :  { %v882_v54 = vpop.f32.mrf.mxu2  ;;  %v378_v56 = vpack.c.bf16 %v359_v50, %v358_v43  ;;  %v3546_v59 = vpack.c.b16 %v1237_v49, %v1236_v47 }
 0x15e   :  { %v883_v57 = vadd.f32 %v3377_v39, %v882_v54  ;;  %v287_v58 = vpop.f32.mrf.mxu0  ;;  %v1189_v5 = vpack.c.bf16 %v1157_v61, %v1157_v61 }
 0x15f   :  { %2578 = vmatmul.msk.bf16.gmra.mxu1 %vm164_vm0, %v378_v56  ;;  %v288_v1 = vadd.f32 %v3363_v32, %v287_v58 }
 0x160   :  { %v925_v60 = vmul.f32 0.01, %v883_v57  ;;  %v1438_v13 = vunpack.c.l.b16 %v1189_v5  ;;  %v3143_v5 = vld [vmem:[%s4001_s2 + $0x1b8] sm:$0xff] }
 0x161   :  { %v1088_v62 = vpop.f32.mrf.mxu3  ;;  %v328_v8 = vmul.f32 0.01, %v288_v1  ;;  %1809 = vmatpush.bf16.msrb.mxu0 %v3143_v5 }
 0x162   :  { %v957_v0 = vmax.f32 %v883_v57, %v925_v60  ;;  %v1089_v2 = vadd.f32 %v3500_v40, %v1088_v62 }
 0x163   :  { %v360_v17 = vmax.f32 %v288_v1, %v328_v8 }
 0x164   :  { %v976_v3 = vpack.c.bf16 %v957_v0, %v956_v63  ;;  %v1158_v4 = vmax.f32 %v1089_v2, 0.0  ;;  %v3551_v6 = vpop.f32.mrf.mxu1 }
 0x165   :  { %v885_v7 = vpop.f32.mrf.mxu2 }
 0x166   :  { %v1190_v9 = vpack.c.bf16 %v1158_v4, %v1158_v4  ;;  %2706 = vmatmul.msk.bf16.gmra.mxu3 %vm164_vm0, %v976_v3  ;;  %v289_v10 = vpop.f32.mrf.mxu0  ;;  %v886_v19 = vadd.f32 %v3377_v39, %v885_v7  ;;  %v3159_v4 = vld [vmem:[%s4001_s2 + $0x238] sm:$0xff] }
 0x167   :  { %v290_v12 = vadd.f32 %v3363_v32, %v289_v10  ;;  %v3167_v7 = vld [vmem:[%s4001_s2 + $0x278] sm:$0xff]  ;;  %1837 = vmatpush.bf16.msrb.mxu2 %v3159_v4 }
 0x168   :  { %v1439_v11 = vunpack.c.l.b16 %v1190_v9  ;;  %v926_v26 = vmul.f32 0.01, %v886_v19  ;;  %1851 = vmatpush.bf16.msrb.mxu3 %v3167_v7 }
 0x169   :  { %v3555_v16 = vpop.f32.mrf.mxu3  ;;  %v329_v18 = vmul.f32 0.01, %v290_v12 }
 0x16a   :  { %v1440_v21 = vpack.c.b16 %v1439_v11, %v1438_v13  ;;  %v958_v31 = vmax.f32 %v886_v19, %v926_v26  ;;  %v3151_v19 = vld [vmem:[%s4001_s2 + $0x1f8] sm:$0xff] }
 0x16b   :  { %v361_v22 = vmax.f32 %v290_v12, %v329_v18  ;;  %1823 = vmatpush.bf16.msrb.mxu1 %v3151_v19  ;;  %v3166_v19 = vld [vmem:[%s4001_s2 + $0x270] sm:$0xff] }
 0x16c   :  { %1441 = vrot.lane.b32.xlu1 %v1440_v21, %s3222_s15  ;;  %v3559_v23 = vpop.f32.mrf.mxu1  ;;  %1852 = vmatpush.bf16.msrb.mxu3 %v3166_v19 }
 0x16d   :  { %v887_v24 = vpop.f32.mrf.mxu2  ;;  %v379_v25 = vpack.c.bf16 %v361_v22, %v360_v17 }
 0x16e   :  { %v888_v27 = vadd.f32 %v3377_v39, %v887_v24  ;;  %v292_v28 = vpop.f32.mrf.mxu0 }
 0x16f   :  { %2579 = vmatmul.msk.bf16.gmra.mxu1 %vm164_vm0, %v379_v25  ;;  %v293_v34 = vadd.f32 %v3363_v32, %v292_v28 }
 0x170   :  { %v927_v29 = vmul.f32 0.01, %v888_v27 }
 0x171   :  { %v3563_v30 = vpop.f32.mrf.mxu3  ;;  %v330_v38 = vmul.f32 0.01, %v293_v34 }
 0x172   :  { %v959_v33 = vmax.f32 %v888_v27, %v927_v29 }
 0x173   :  { %v362_v45 = vmax.f32 %v293_v34, %v330_v38 }
 0x174   :  { %v977_v35 = vpack.c.bf16 %v959_v33, %v958_v31  ;;  %v3566_v36 = vpop.f32.mrf.mxu1 }
 0x175   :  { %v890_v37 = vpop.f32.mrf.mxu2 }
 0x176   :  { %2707 = vmatmul.msk.bf16.gmra.mxu3 %vm164_vm0, %v977_v35  ;;  %v294_v41 = vpop.f32.mrf.mxu0  ;;  %v891_v44 = vadd.f32 %v3377_v39, %v890_v37 }
 0x177   :  { %v295_v42 = vadd.f32 %v3363_v32, %v294_v41 }
 0x178   :  { %v928_v51 = vmul.f32 0.01, %v891_v44 }
 0x179   :  { %v1096_v43 = vpop.f32.mrf.mxu3  ;;  %v331_v46 = vmul.f32 0.01, %v295_v42 }
 0x17a   :  { %v1097_v47 = vadd.f32 %v3500_v40, %v1096_v43  ;;  %v960_v61 = vmax.f32 %v891_v44, %v928_v51 }
 0x17b   :  { %v363_v50 = vmax.f32 %v295_v42, %v331_v46 }
 0x17c   :  { %v3572_v48 = vpop.f32.mrf.mxu1  ;;  %v1161_v57 = vmax.f32 %v1097_v47, 0.0 }
 0x17d   :  { %v892_v49 = vpop.f32.mrf.mxu2  ;;  %v380_v55 = vpack.c.bf16 %v363_v50, %v362_v45 }
 0x17e   :  { %v893_v54 = vadd.f32 %v3377_v39, %v892_v49  ;;  %v297_v56 = vpop.f32.mrf.mxu0  ;;  %v1193_v1 = vpack.c.bf16 %v1161_v57, %v1161_v57 }
 0x17f   :  { %2580 = vmatmul.msk.bf16.gmra.mxu1 %vm164_vm0, %v380_v55  ;;  %v298_v0 = vadd.f32 %v3363_v32, %v297_v56 }
 0x180   :  { %v929_v58 = vmul.f32 0.01, %v893_v54  ;;  %v1450_v13 = vunpack.c.l.b16 %v1193_v1 }
 0x181   :  { %v1098_v60 = vpop.f32.mrf.mxu3  ;;  %v332_v11 = vmul.f32 0.01, %v298_v0 }
 0x182   :  { %v961_v62 = vmax.f32 %v893_v54, %v929_v58  ;;  %v1099_v63 = vadd.f32 %v3500_v40, %v1098_v60 }
 0x183   :  { %v364_v25 = vmax.f32 %v298_v0, %v332_v11 }
 0x184   :  { %v978_v2 = vpack.c.bf16 %v961_v62, %v960_v61  ;;  %v1162_v3 = vmax.f32 %v1099_v63, 0.0  ;;  %v3587_v8 = vpop.f32.mrf.mxu1 }
 0x185   :  { %v895_v9 = vpop.f32.mrf.mxu2 }
 0x186   :  { %v1194_v10 = vpack.c.bf16 %v1162_v3, %v1162_v3  ;;  %2708 = vmatmul.msk.bf16.gmra.mxu3 %vm164_vm0, %v978_v2  ;;  %v299_v12 = vpop.f32.mrf.mxu0  ;;  %v896_v22 = vadd.f32 %v3377_v39, %v895_v9 }
 0x187   :  { %v300_v18 = vadd.f32 %v3363_v32, %v299_v12 }
 0x188   :  { %v1451_v17 = vunpack.c.l.b16 %v1194_v10  ;;  %v930_v32 = vmul.f32 0.01, %v896_v22 }
 0x189   :  { %v1101_v21 = vpop.f32.mrf.mxu3  ;;  %v333_v26 = vmul.f32 0.01, %v300_v18 }
 0x18a   :  { %v1452_v24 = vpack.c.b16 %v1451_v17, %v1450_v13  ;;  %v1102_v27 = vadd.f32 %v3500_v40, %v1101_v21  ;;  %v962_v42 = vmax.f32 %v896_v22, %v930_v32 }
 0x18b   :  { %v365_v31 = vmax.f32 %v300_v18, %v333_v26  ;;  %v3158_v18 = vld [vmem:[%s4001_s2 + $0x230] sm:$0xff] }
 0x18c   :  { %1453 = vrot.lane.b32.xlu2 %v1452_v24, %s3220_s13  ;;  %v508_v28 = vpop.f32.mrf.mxu1  ;;  %v1163_v37 = vmax.f32 %v1102_v27, 0.0  ;;  %1838 = vmatpush.bf16.msrb.mxu2 %v3158_v18 }
 0x18d   :  { %v897_v29 = vpop.f32.mrf.mxu2  ;;  %v509_v33 = vadd.f32 %v3488_v15, %v508_v28  ;;  %v381_v35 = vpack.c.bf16 %v365_v31, %v364_v25  ;;  %v3150_v28 = vld [vmem:[%s4001_s2 + $0x1f0] sm:$0xff] }
 0x18e   :  { %v898_v34 = vadd.f32 %v3377_v39, %v897_v29  ;;  %v1195_v46 = vpack.c.bf16 %v1163_v37, %v1163_v37  ;;  %v3141_v29 = vld [vmem:[%s4001_s2 + $0x1a8] sm:$0xff]  ;;  %1824 = vmatpush.bf16.msrb.mxu1 %v3150_v28 }
 0x18f   :  { %2581 = vmatmul.msk.bf16.gmra.mxu1 %vm164_vm0, %v381_v35  ;;  %v567_v43 = vmax.f32 %v509_v33, 0.0 }
 0x190   :  { %v931_v38 = vmul.f32 0.01, %v898_v34  ;;  %v1457_v39 = vunpack.c.l.b16 %v1195_v46 }
 0x191   :  { %v1103_v41 = vpop.f32.mrf.mxu3  ;;  %v599_v51 = vpack.c.bf16 %v567_v43, %v567_v43 }
 0x192   :  { %v963_v44 = vmax.f32 %v898_v34, %v931_v38  ;;  %v1104_v45 = vadd.f32 %v3500_v40, %v1103_v41  ;;  %v3140_v38 = vld [vmem:[%s4001_s2 + $0x1a0] sm:$0xff] }
 0x193   :  { %v1262_v60 = vunpack.c.l.b16 %v599_v51 }
 0x194   :  { %v979_v47 = vpack.c.bf16 %v963_v44, %v962_v42  ;;  %v1164_v49 = vmax.f32 %v1104_v45, 0.0  ;;  %v510_v50 = vpop.f32.mrf.mxu1  ;;  %v3139_v45 = vld [vmem:[%s4001_s2 + $0x198] sm:$0xff] }
 0x195   :  { %v511_v55 = vadd.f32 %v3488_v15, %v510_v50 }
 0x196   :  { %v1196_v54 = vpack.c.bf16 %v1164_v49, %v1164_v49  ;;  %2709 = vmatmul.msk.bf16.gmra.mxu3 %vm164_vm0, %v979_v47 }
 0x197   :  { %v568_v57 = vmax.f32 %v511_v55, 0.0 }
 0x198   :  { %v1458_v56 = vunpack.c.l.b16 %v1196_v54  ;;  %v3138_v54 = vld [vmem:[%s4001_s2 + $0x190] sm:$0xff] }
 0x199   :  { %v1106_v58 = vpop.f32.mrf.mxu3  ;;  %v600_v61 = vpack.c.bf16 %v568_v57, %v568_v57  ;;  %v1226_v62 = vpop.permute.xlu2 %1225 }
 0x19a   :  { %v1459_v63 = vpack.c.b16 %v1458_v56, %v1457_v39  ;;  %v3605_v0 = vsel %vm1319_vm1, %v3504_v52, %v1226_v62  ;;  %v1107_v2 = vadd.f32 %v3500_v40, %v1106_v58  ;;  %v3142_v52 = vld [vmem:[%s4001_s2 + $0x1b0] sm:$0xff] }
 0x19b   :  { %v1263_v1 = vunpack.c.l.b16 %v600_v61  ;;  %1810 = vmatpush.bf16.msrb.mxu0 %v3142_v52  ;;  %v3137_v61 = vld [vmem:[%s4001_s2 + $0x188] sm:$0xff] }
 0x19c   :  { %1460 = vrot.lane.b32.xlu1 %v1459_v63, %s3221_s14  ;;  %v513_v3 = vpop.f32.mrf.mxu1  ;;  %v1165_v7 = vmax.f32 %v1107_v2, 0.0 }
 0x19d   :  { %v514_v4 = vadd.f32 %v3488_v15, %v513_v3  ;;  %v3610_v5 = vpack.c.b16 %v1263_v1, %v1262_v60 }
 0x19e   :  { %v1197_v12 = vpack.c.bf16 %v1165_v7, %v1165_v7  ;;  %v3136_v7 = vld [vmem:[%s4001_s2 + $0x180] sm:$0xff] }
 0x19f   :  { %v569_v10 = vmax.f32 %v514_v4, 0.0  ;;  %1811 = vmatpush.bf16.msrb.mxu0 %v3141_v29 }
 0x1a0   :  { %v1464_v25 = vunpack.c.l.b16 %v1197_v12 }
 0x1a1   :  { %v1108_v9 = vpop.f32.mrf.mxu3  ;;  %v601_v21 = vpack.c.bf16 %v569_v10, %v569_v10 }
 0x1a2   :  { %v1109_v11 = vadd.f32 %v3500_v40, %v1108_v9 }
 0x1a3   :  { %v1269_v32 = vunpack.c.l.b16 %v601_v21  ;;  %1812 = vmatpush.bf16.msrb.mxu0 %v3140_v38 }
 0x1a4   :  { %v1166_v13 = vmax.f32 %v1109_v11, 0.0  ;;  %v515_v17 = vpop.f32.mrf.mxu1 }
 0x1a5   :  { %v516_v24 = vadd.f32 %v3488_v15, %v515_v17 }
 0x1a6   :  { %v1198_v22 = vpack.c.bf16 %v1166_v13, %v1166_v13 }
 0x1a7   :  { %v570_v27 = vmax.f32 %v516_v24, 0.0  ;;  %1813 = vmatpush.bf16.msrb.mxu0 %v3139_v45  ;;  %v3165_v24 = vld [vmem:[%s4001_s2 + $0x268] sm:$0xff] }
 0x1a8   :  { %v1465_v26 = vunpack.c.l.b16 %v1198_v22  ;;  %v3157_v22 = vld [vmem:[%s4001_s2 + $0x228] sm:$0xff]  ;;  %1853 = vmatpush.bf16.msrb.mxu3 %v3165_v24 }
 0x1a9   :  { %v1111_v31 = vpop.f32.mrf.mxu3  ;;  %v602_v33 = vpack.c.bf16 %v570_v27, %v570_v27  ;;  %1839 = vmatpush.bf16.msrb.mxu2 %v3157_v22 }
 0x1aa   :  { %v1466_v34 = vpack.c.b16 %v1465_v26, %v1464_v25  ;;  %v1112_v37 = vadd.f32 %v3500_v40, %v1111_v31 }
 0x1ab   :  { %v1270_v35 = vunpack.c.l.b16 %v602_v33  ;;  %1814 = vmatpush.bf16.msrb.mxu0 %v3138_v54 }
 0x1ac   :  { %1467 = vrot.lane.b32.xlu2 %v1466_v34, %s3222_s15  ;;  %v518_v42 = vpop.f32.mrf.mxu1  ;;  %v1167_v44 = vmax.f32 %v1112_v37, 0.0 }
 0x1ad   :  { %v3634_v41 = vpack.c.b16 %v1270_v35, %v1269_v32  ;;  %v519_v43 = vadd.f32 %v3488_v15, %v518_v42  ;;  %v3149_v32 = vld [vmem:[%s4001_s2 + $0x1e8] sm:$0xff] }
 0x1ae   :  { %v1199_v50 = vpack.c.bf16 %v1167_v44, %v1167_v44  ;;  %1825 = vmatpush.bf16.msrb.mxu1 %v3149_v32 }
 0x1af   :  { %v571_v49 = vmax.f32 %v519_v43, 0.0  ;;  %1815 = vmatpush.bf16.msrb.mxu0 %v3137_v61 }
 0x1b0   :  { %v1471_v58 = vunpack.c.l.b16 %v1199_v50 }
 0x1b1   :  { %v1113_v46 = vpop.f32.mrf.mxu3  ;;  %v603_v56 = vpack.c.bf16 %v571_v49, %v571_v49 }
 0x1b2   :  { %v1114_v47 = vadd.f32 %v3500_v40, %v1113_v46 }
 0x1b3   :  { %v1274_v2 = vunpack.c.l.b16 %v603_v56  ;;  %1816 = vmatpush.bf16.msrb.mxu0 %v3136_v7 }
 0x1b4   :  { %v1168_v51 = vmax.f32 %v1114_v47, 0.0  ;;  %v520_v39 = vpop.f32.mrf.mxu1 }
 0x1b5   :  { %v521_v57 = vadd.f32 %v3488_v15, %v520_v39 }
 0x1b6   :  { %v1200_v55 = vpack.c.bf16 %v1168_v51, %v1168_v51 }
 0x1b7   :  { %v572_v62 = vmax.f32 %v521_v57, 0.0 }
 0x1b8   :  { %v1472_v60 = vunpack.c.l.b16 %v1200_v55 }
 0x1b9   :  { %v1116_v63 = vpop.f32.mrf.mxu3  ;;  %v604_v3 = vpack.c.bf16 %v572_v62, %v572_v62 }
 0x1ba   :  { %v3648_v1 = vpack.c.b16 %v1472_v60, %v1471_v58  ;;  %v1117_v4 = vadd.f32 %v3500_v40, %v1116_v63 }
 0x1bb   :  { %v1275_v9 = vunpack.c.l.b16 %v604_v3 }
 0x1bc   :  { %v523_v10 = vpop.f32.mrf.mxu1  ;;  %v1169_v13 = vmax.f32 %v1117_v4, 0.0 }
 0x1bd   :  { %v524_v11 = vadd.f32 %v3488_v15, %v523_v10  ;;  %v1276_v12 = vpack.c.b16 %v1275_v9, %v1274_v2 }
 0x1be   :  { %v1201_v19 = vpack.c.bf16 %v1169_v13, %v1169_v13  ;;  %v1428_v57 = vpop.permute.xlu1 %1427  ;;  %v1435_v13 = vpop.permute.xlu2 %1434 }
 0x1bf   :  { %1277 = vrot.lane.b32.xlu0 %v1276_v12, %s3220_s13  ;;  %v573_v18 = vmax.f32 %v524_v11, 0.0  ;;  %v1523_v7 = vsel %vm1319_vm1, %v3514_v20, %v1428_v57  ;;  %v3148_v12 = vld [vmem:[%s4001_s2 + $0x1e0] sm:$0xff] }
 0x1c0   :  { %v1476_v29 = vunpack.c.l.b16 %v1201_v19  ;;  %v1525_v19 = vsel %vm164_vm0, %v1523_v7, %v1435_v13  ;;  %1826 = vmatpush.bf16.msrb.mxu1 %v3148_v12 }
 0x1c1   :  { %v1118_v52 = vpop.f32.mrf.mxu3  ;;  %v605_v27 = vpack.c.bf16 %v573_v18, %v573_v18 }
 0x1c2   :  { %v1119_v17 = vadd.f32 %v3500_v40, %v1118_v52 }
 0x1c3   :  { %v1281_v37 = vunpack.c.l.b16 %v605_v27  ;;  %v3147_v27 = vld [vmem:[%s4001_s2 + $0x1d8] sm:$0xff] }
 0x1c4   :  { %v1170_v21 = vmax.f32 %v1119_v17, 0.0  ;;  %v525_v26 = vpop.f32.mrf.mxu1  ;;  %1827 = vmatpush.bf16.msrb.mxu1 %v3147_v27 }
 0x1c5   :  { %v526_v28 = vadd.f32 %v3488_v15, %v525_v26  ;;  %v3164_v26 = vld [vmem:[%s4001_s2 + $0x260] sm:$0xff] }
 0x1c6   :  { %v1202_v25 = vpack.c.bf16 %v1170_v21, %v1170_v21  ;;  %1854 = vmatpush.bf16.msrb.mxu3 %v3164_v26 }
 0x1c7   :  { %v574_v33 = vmax.f32 %v526_v28, 0.0 }
 0x1c8   :  { %v1477_v31 = vunpack.c.l.b16 %v1202_v25  ;;  %v3156_v25 = vld [vmem:[%s4001_s2 + $0x220] sm:$0xff] }
 0x1c9   :  { %v1121_v34 = vpop.f32.mrf.mxu3  ;;  %v606_v38 = vpack.c.bf16 %v574_v33, %v574_v33  ;;  %1840 = vmatpush.bf16.msrb.mxu2 %v3156_v25  ;;  %v3146_v33 = vld [vmem:[%s4001_s2 + $0x1d0] sm:$0xff]  ;;  %v506_v25 = vadd.f32 %v3488_v15, %v3587_v8 }
 0x1ca   :  { %v1478_v35 = vpack.c.b16 %v1477_v31, %v1476_v29  ;;  %v1122_v42 = vadd.f32 %v3500_v40, %v1121_v34  ;;  %1828 = vmatpush.bf16.msrb.mxu1 %v3146_v33 }
 0x1cb   :  { %v1282_v43 = vunpack.c.l.b16 %v606_v38 }
 0x1cc   :  { %1479 = vrot.lane.b32.xlu0 %v1478_v35, %s3220_s13  ;;  %v528_v44 = vpop.f32.mrf.mxu1  ;;  %v1171_v46 = vmax.f32 %v1122_v42, 0.0 }
 0x1cd   :  { %v1283_v45 = vpack.c.b16 %v1282_v43, %v1281_v37  ;;  %v529_v47 = vadd.f32 %v3488_v15, %v528_v44 }
 0x1ce   :  { %v1203_v51 = vpack.c.bf16 %v1171_v46, %v1171_v46  ;;  %v3145_v46 = vld [vmem:[%s4001_s2 + $0x1c8] sm:$0xff] }
 0x1cf   :  { %1284 = vrot.lane.b32.xlu1 %v1283_v45, %s3221_s14  ;;  %v575_v54 = vmax.f32 %v529_v47, 0.0  ;;  %1829 = vmatpush.bf16.msrb.mxu1 %v3145_v46 }
 0x1d0   :  { %v1483_v60 = vunpack.c.l.b16 %v1203_v51 }
 0x1d1   :  { %v1123_v49 = vpop.f32.mrf.mxu3  ;;  %v607_v61 = vpack.c.bf16 %v575_v54, %v575_v54 }
 0x1d2   :  { %v1124_v50 = vadd.f32 %v3500_v40, %v1123_v49 }
 0x1d3   :  { %v1288_v9 = vunpack.c.l.b16 %v607_v61 }
 0x1d4   :  { %v1172_v55 = vmax.f32 %v1124_v50, 0.0  ;;  %v530_v56 = vpop.f32.mrf.mxu1 }
 0x1d5   :  { %v531_v58 = vadd.f32 %v3488_v15, %v530_v56 }
 0x1d6   :  { %v1204_v39 = vpack.c.bf16 %v1172_v55, %v1172_v55  ;;  %v3144_v55 = vld [vmem:[%s4001_s2 + $0x1c0] sm:$0xff] }
 0x1d7   :  { %v576_v63 = vmax.f32 %v531_v58, 0.0  ;;  %1830 = vmatpush.bf16.msrb.mxu1 %v3144_v55 }
 0x1d8   :  { %v1484_v62 = vunpack.c.l.b16 %v1204_v39 }
 0x1d9   :  { %v1126_v2 = vpop.f32.mrf.mxu3  ;;  %v608_v4 = vpack.c.bf16 %v576_v63, %v576_v63 }
 0x1da   :  { %v1485_v3 = vpack.c.b16 %v1484_v62, %v1483_v60  ;;  %v1127_v10 = vadd.f32 %v3500_v40, %v1126_v2 }
 0x1db   :  { %v1289_v11 = vunpack.c.l.b16 %v608_v4 }
 0x1dc   :  { %1486 = vrot.lane.b32.xlu0 %v1485_v3, %s3221_s14  ;;  %v533_v52 = vpop.f32.mrf.mxu1  ;;  %v1173_v20 = vmax.f32 %v1127_v10, 0.0 }
 0x1dd   :  { %v534_v17 = vadd.f32 %v3488_v15, %v533_v52  ;;  %v1290_v22 = vpack.c.b16 %v1289_v11, %v1288_v9 }
 0x1de   :  { %v1442_v18 = vpop.permute.xlu1 %1441  ;;  %v1205_v31 = vpack.c.bf16 %v1173_v20, %v1173_v20 }
 0x1df   :  { %v1527_v21 = vsel %vm1325_vm2, %v1525_v19, %v1442_v18  ;;  %v577_v29 = vmax.f32 %v534_v17, 0.0  ;;  %v1094_v19 = vadd.f32 %v3500_v40, %v3563_v30  ;;  %v3155_v30 = vld [vmem:[%s4001_s2 + $0x218] sm:$0xff] }
 0x1e0   :  { %1817 = vmatmul.bf16.vlgmr.msrb.gmra.mxu0 %v1527_v21  ;;  %v1490_v42 = vunpack.c.l.b16 %v1205_v31  ;;  %1841 = vmatpush.bf16.msrb.mxu2 %v3155_v30  ;;  %v3154_v30 = vld [vmem:[%s4001_s2 + $0x210] sm:$0xff] }
 0x1e1   :  { %v1128_v24 = vpop.f32.mrf.mxu3  ;;  %v609_v37 = vpack.c.bf16 %v577_v29, %v577_v29  ;;  %v1160_v27 = vmax.f32 %v1094_v19, 0.0  ;;  %v3163_v29 = vld [vmem:[%s4001_s2 + $0x258] sm:$0xff] }
 0x1e2   :  { %v1129_v28 = vadd.f32 %v3500_v40, %v1128_v24  ;;  %v504_v24 = vadd.f32 %v3488_v15, %v3572_v48  ;;  %v566_v48 = vmax.f32 %v506_v25, 0.0  ;;  %1855 = vmatpush.bf16.msrb.mxu3 %v3163_v29 }
 0x1e3   :  { %v1295_v49 = vunpack.c.l.b16 %v609_v37 }
 0x1e4   :  { %v1174_v32 = vmax.f32 %v1129_v28, 0.0  ;;  %1291 = vrot.lane.b32.xlu0 %v1290_v22, %s3222_s15  ;;  %v535_v35 = vpop.f32.mrf.mxu1  ;;  %v1092_v22 = vadd.f32 %v3500_v40, %v3555_v16  ;;  %1842 = vmatpush.bf16.msrb.mxu2 %v3154_v30 }
 0x1e5   :  { %v536_v38 = vadd.f32 %v3488_v15, %v535_v35 }
 0x1e6   :  { %v1206_v34 = vpack.c.bf16 %v1174_v32, %v1174_v32  ;;  %v1159_v16 = vmax.f32 %v1092_v22, 0.0  ;;  %v565_v32 = vmax.f32 %v504_v24, 0.0 }
 0x1e7   :  { %v578_v44 = vmax.f32 %v536_v38, 0.0  ;;  %v598_v38 = vpack.c.bf16 %v566_v48, %v566_v48 }
 0x1e8   :  { %v1491_v43 = vunpack.c.l.b16 %v1206_v34  ;;  %v1191_v35 = vpack.c.bf16 %v1159_v16, %v1159_v16  ;;  %v597_v37 = vpack.c.bf16 %v565_v32, %v565_v32 }
 0x1e9   :  { %v1131_v45 = vpop.f32.mrf.mxu3  ;;  %v610_v50 = vpack.c.bf16 %v578_v44, %v578_v44 }
 0x1ea   :  { %v1492_v47 = vpack.c.b16 %v1491_v43, %v1490_v42  ;;  %v1132_v51 = vadd.f32 %v3500_v40, %v1131_v45  ;;  %v1454_v42 = vpop.permute.xlu2 %1453 }
 0x1eb   :  { %v1296_v54 = vunpack.c.l.b16 %v610_v50 }
 0x1ec   :  { %1493 = vrot.lane.b32.xlu1 %v1492_v47, %s3222_s15  ;;  %v538_v39 = vpop.f32.mrf.mxu1  ;;  %v1175_v58 = vmax.f32 %v1132_v51, 0.0  ;;  %v1445_v47 = vunpack.c.l.b16 %v1191_v35 }
 0x1ed   :  { %v3706_v56 = vpack.c.b16 %v1296_v54, %v1295_v49  ;;  %v539_v57 = vadd.f32 %v3488_v15, %v538_v39  ;;  %v3735_v49 = vld [vmem:[%s4002_s3 + $0x1] ss:$0 sm:$0xff]  ;;  %v1255_v39 = vunpack.c.l.b16 %v597_v37 }
 0x1ee   :  { %v1207_v63 = vpack.c.bf16 %v1175_v58, %v1175_v58  ;;  %v499_v50 = vadd.f32 %v3735_v49, %v3559_v23  ;;  %v501_v55 = vadd.f32 %v3735_v49, %v3566_v36 }
 0x1ef   :  { %v579_v62 = vmax.f32 %v539_v57, 0.0  ;;  %v1256_v57 = vunpack.c.l.b16 %v598_v38 }
 0x1f0   :  { %v1497_v10 = vunpack.c.l.b16 %v1207_v63  ;;  %v563_v63 = vmax.f32 %v499_v50, 0.0 }
 0x1f1   :  { %v1133_v60 = vpop.f32.mrf.mxu3  ;;  %v611_v7 = vpack.c.bf16 %v579_v62, %v579_v62 }
 0x1f2   :  { %v1134_v61 = vadd.f32 %v3500_v40, %v1133_v60 }
 0x1f3   :  { %v1300_v17 = vunpack.c.l.b16 %v611_v7 }
 0x1f4   :  { %v1176_v2 = vmax.f32 %v1134_v61, 0.0  ;;  %v540_v4 = vpop.f32.mrf.mxu1 }
 0x1f5   :  { %v541_v9 = vadd.f32 %v3488_v15, %v540_v4  ;;  %v1192_v15 = vpack.c.bf16 %v1160_v27, %v1160_v27  ;;  %v1257_v4 = vpack.c.b16 %v1256_v57, %v1255_v39  ;;  %v3152_v57 = vld [vmem:[%s4001_s2 + $0x200] sm:$0xff] }
 0x1f6   :  { %v1208_v3 = vpack.c.bf16 %v1176_v2, %v1176_v2  ;;  %v564_v2 = vmax.f32 %v501_v55, 0.0 }
 0x1f7   :  { %v580_v12 = vmax.f32 %v541_v9, 0.0  ;;  %v1446_v44 = vunpack.c.l.b16 %v1192_v15  ;;  %v3153_v15 = vld [vmem:[%s4001_s2 + $0x208] sm:$0xff] }
 0x1f8   :  { %v1498_v11 = vunpack.c.l.b16 %v1208_v3  ;;  %1843 = vmatpush.bf16.msrb.mxu2 %v3153_v15 }
 0x1f9   :  { %v1136_v52 = vpop.f32.mrf.mxu3  ;;  %v612_v18 = vpack.c.bf16 %v580_v12, %v580_v12  ;;  %v1447_v60 = vpack.c.b16 %v1446_v44, %v1445_v47 }
 0x1fa   :  { %v3711_v13 = vpack.c.b16 %v1498_v11, %v1497_v10  ;;  %v1137_v21 = vadd.f32 %v3500_v40, %v1136_v52  ;;  %v595_v10 = vpack.c.bf16 %v563_v63, %v563_v63  ;;  %v3219_v11 = vld [vmem:[%s4002_s3 + $0x3] ss:$0 sm:$0xff] }
 0x1fb   :  { %v1301_v20 = vunpack.c.l.b16 %v612_v18  ;;  %v1531_v61 = vsel %vm1319_vm1, %v1447_v60, %v1454_v42  ;;  %v3126_v60 = vld [vmem:[%s4001_s2 + $0x130] sm:$0xff] }
 0x1fc   :  { %v1177_v28 = vmax.f32 %v1137_v21, 0.0  ;;  %v543_v51 = vpop.f32.mrf.mxu1  ;;  %v1248_v19 = vunpack.c.l.b16 %v595_v10  ;;  %1844 = vmatpush.bf16.msrb.mxu2 %v3152_v57  ;;  %v3123_v10 = vld [vmem:[%s4001_s2 + $0x118] sm:$0xff] }
 0x1fd   :  { %v1302_v26 = vpack.c.b16 %v1301_v20, %v1300_v17 }
 0x1fe   :  { %v1209_v8 = vpack.c.bf16 %v1177_v28, %v1177_v28 }
 0x1ff   :  { %1303 = vrot.lane.b32.xlu1 %v1302_v26, %s3220_s13 }
 0x200   :  { %v1502_v45 = vunpack.c.l.b16 %v1209_v8 }
 0x201   :  { %v1138_v31 = vpop.f32.mrf.mxu3 }
 0x202   :  { %v1139_v33 = vadd.f32 %v3500_v40, %v1138_v31  ;;  %v544_v31 = vadd.f32 %v3735_v49, %v543_v51 }
 0x204   :  { %v1178_v34 = vmax.f32 %v1139_v33, 0.0  ;;  %v545_v52 = vpop.f32.mrf.mxu1  ;;  %v581_v35 = vmax.f32 %v544_v31, 0.0 }
 0x205   :  { %v546_v48 = vadd.f32 %v3735_v49, %v545_v52  ;;  %v3108_v52 = vld [vmem:[%s4001_s2 + $0xa0] sm:$0xff] }
 0x206   :  { %v1210_v43 = vpack.c.bf16 %v1178_v34, %v1178_v34  ;;  %v1468_v3 = vpop.permute.xlu2 %1467 }
 0x207   :  { %1239 = vrot.lane.b32.xlu1 %v3546_v59, %s3222_s15  ;;  %v582_v37 = vmax.f32 %v546_v48, 0.0 }
 0x208   :  { %v1503_v46 = vunpack.c.l.b16 %v1210_v43 }
 0x209   :  { %v1141_v54 = vpop.f32.mrf.mxu3 }
 0x20a   :  { %v1504_v58 = vpack.c.b16 %v1503_v46, %v1502_v45  ;;  %v1142_v59 = vadd.f32 %v3500_v40, %v1141_v54  ;;  %v596_v40 = vpack.c.bf16 %v564_v2, %v564_v2  ;;  %v613_v45 = vpack.c.bf16 %v581_v35, %v581_v35 }
 0x20b   :  { %v614_v46 = vpack.c.bf16 %v582_v37, %v582_v37 }
 0x20c   :  { %1505 = vrot.lane.b32.xlu2 %v1504_v58, %s3220_s13  ;;  %v1179_v36 = vmax.f32 %v1142_v59, 0.0  ;;  %v1249_v20 = vunpack.c.l.b16 %v596_v40  ;;  %v548_v29 = vpop.f32.mrf.mxu1  ;;  %v1307_v54 = vunpack.c.l.b16 %v613_v45  ;;  %v3127_v58 = vld [vmem:[%s4001_s2 + $0x138] sm:$0xff]  ;;  %v3109_v40 = vld [vmem:[%s4001_s2 + $0xa8] sm:$0xff]  ;;  %v494_v45 = vadd.f32 %v3735_v49, %v3543_v53  ;;  %v3132_v53 = vld [vmem:[%s4001_s2 + $0x160] sm:$0xff] }
 0x20d   :  { %v549_v47 = vadd.f32 %v3735_v49, %v548_v29  ;;  %v1308_v55 = vunpack.c.l.b16 %v614_v46  ;;  %2085 = vmatpush.bf16.msra.mxu2 %v3127_v58  ;;  %v3104_v29 = vld [vmem:[%s4001_s2 + $0x80] sm:$0xff]  ;;  %v496_v46 = vadd.f32 %v3735_v49, %v3551_v6 }
 0x20e   :  { %v1461_v62 = vpop.permute.xlu1 %1460  ;;  %v1211_v17 = vpack.c.bf16 %v1179_v36, %v1179_v36  ;;  %v1250_v27 = vpack.c.b16 %v1249_v20, %v1248_v19  ;;  %v3161_v36 = vld [vmem:[%s4001_s2 + $0x248] sm:$0xff]  ;;  %v3107_v19 = vld [vmem:[%s4001_s2 + $0x98] sm:$0xff] }
 0x20f   :  { %v1533_v23 = vsel %vm164_vm0, %v1531_v61, %v1461_v62  ;;  %1258 = vrot.lane.b32.xlu1 %v1257_v4, %s3221_s14  ;;  %v583_v39 = vmax.f32 %v549_v47, 0.0  ;;  %v1309_v62 = vpack.c.b16 %v1308_v55, %v1307_v54  ;;  %v3111_v4 = vld [vmem:[%s4001_s2 + $0xb8] sm:$0xff]  ;;  %v3133_v54 = vld [vmem:[%s4001_s2 + $0x168] sm:$0xff] }
 0x210   :  { %v1535_v7 = vsel %vm1325_vm2, %v1533_v23, %v1468_v3  ;;  %v1509_v22 = vunpack.c.l.b16 %v1211_v17  ;;  %v3125_v3 = vld [vmem:[%s4001_s2 + $0x128] sm:$0xff]  ;;  %2057 = vmatpush.bf16.msra.mxu0 %v3111_v4 }
 0x211   :  { %1831 = vmatmul.bf16.vlgmr.msrb.gmra.mxu1 %v1535_v7  ;;  %v1143_v9 = vpop.f32.mrf.mxu3  ;;  %v615_v59 = vpack.c.bf16 %v583_v39, %v583_v39  ;;  %2086 = vmatpush.bf16.msra.mxu2 %v3126_v60  ;;  %v3124_v7 = vld [vmem:[%s4001_s2 + $0x120] sm:$0xff]  ;;  %v3121_v17 = vld [vmem:[%s4001_s2 + $0x108] sm:$0xff] }
 0x212   :  { %v1144_v12 = vadd.f32 %v3219_v11, %v1143_v9  ;;  %v3110_v9 = vld [vmem:[%s4001_s2 + $0xb0] sm:$0xff]  ;;  %v3129_v4 = vld [vmem:[%s4001_s2 + $0x148] sm:$0xff] }
 0x213   :  { %v1314_v63 = vunpack.c.l.b16 %v615_v59  ;;  %v3131_v59 = vld [vmem:[%s4001_s2 + $0x158] sm:$0xff] }
 0x214   :  { %v1180_v18 = vmax.f32 %v1144_v12, 0.0  ;;  %1232 = vrot.lane.b32.xlu2 %v3532_v14, %s3221_s14  ;;  %v3162_v14 = vld [vmem:[%s4001_s2 + $0x250] sm:$0xff]  ;;  %v550_v42 = vpop.f32.mrf.mxu1  ;;  %2058 = vmatpush.bf16.msra.mxu0 %v3110_v9  ;;  %v3119_v12 = vld [vmem:[%s4001_s2 + $0xf8] sm:$0xff] }
 0x215   :  { %1856 = vmatpush.bf16.msrb.mxu3 %v3162_v14  ;;  %v551_v50 = vadd.f32 %v3735_v49, %v550_v42  ;;  %2087 = vmatpush.bf16.msra.mxu2 %v3125_v3  ;;  %v3114_v14 = vld [vmem:[%s4001_s2 + $0xd0] sm:$0xff] }
 0x216   :  { %v1212_v21 = vpack.c.bf16 %v1180_v18, %v1180_v18  ;;  %2071 = vmatpush.bf16.msra.mxu1 %v3119_v12  ;;  %v3118_v18 = vld [vmem:[%s4001_s2 + $0xf0] sm:$0xff] }
 0x218   :  { %v1510_v24 = vunpack.c.l.b16 %v1212_v21  ;;  %2059 = vmatpush.bf16.msra.mxu0 %v3109_v40  ;;  %v3120_v21 = vld [vmem:[%s4001_s2 + $0x100] sm:$0xff] }
 0x219   :  { %v1146_v25 = vpop.f32.mrf.mxu3  ;;  %2088 = vmatpush.bf16.msra.mxu2 %v3124_v7  ;;  %1857 = vmatpush.bf16.msrb.mxu3 %v3161_v36  ;;  %v3128_v7 = vld [vmem:[%s4001_s2 + $0x140] sm:$0xff] }
 0x21a   :  { %v1511_v26 = vpack.c.b16 %v1510_v24, %v1509_v22  ;;  %v1147_v28 = vadd.f32 %v3219_v11, %v1146_v25  ;;  %2072 = vmatpush.bf16.msra.mxu1 %v3118_v18  ;;  %v3117_v22 = vld [vmem:[%s4001_s2 + $0xe8] sm:$0xff]  ;;  %v3106_v24 = vld [vmem:[%s4001_s2 + $0x90] sm:$0xff]  ;;  %v3116_v25 = vld [vmem:[%s4001_s2 + $0xe0] sm:$0xff] }
 0x21c   :  { %1512 = vrot.lane.b32.xlu0 %v1511_v26, %s3221_s14  ;;  %1251 = vrot.lane.b32.xlu2 %v1250_v27, %s3220_s13  ;;  %v1181_v16 = vmax.f32 %v1147_v28, 0.0  ;;  %v3105_v27 = vld [vmem:[%s4001_s2 + $0x88] sm:$0xff]  ;;  %v3115_v28 = vld [vmem:[%s4001_s2 + $0xd8] sm:$0xff] }
 0x21d   :  { %2089 = vmatpush.bf16.msra.mxu2 %v3123_v10  ;;  %2060 = vmatpush.bf16.msra.mxu0 %v3108_v52 }
 0x21e   :  { %v1213_v8 = vpack.c.bf16 %v1181_v16, %v1181_v16  ;;  %2073 = vmatpush.bf16.msra.mxu1 %v3117_v22  ;;  %v3171_v22 = vld [vmem:[%s4001_s2 + $0x298] sm:$0xff] }
 0x220   :  { %v1516_v43 = vunpack.c.l.b16 %v1213_v8  ;;  %v3160_v8 = vld [vmem:[%s4001_s2 + $0x240] sm:$0xff] }
 0x221   :  { %v1148_v32 = vpop.f32.mrf.mxu3  ;;  %2061 = vmatpush.bf16.msra.mxu0 %v3107_v19  ;;  %1858 = vmatpush.bf16.msrb.mxu3 %v3160_v8 }
 0x222   :  { %v1149_v33 = vadd.f32 %v3219_v11, %v1148_v32  ;;  %v3122_v11 = vld [vmem:[%s4001_s2 + $0x110] sm:$0xff]  ;;  %2074 = vmatpush.bf16.msra.mxu1 %v3116_v25  ;;  %v3113_v32 = vld [vmem:[%s4001_s2 + $0xc8] sm:$0xff] }
 0x223   :  { %2090 = vmatpush.bf16.msra.mxu2 %v3122_v11  ;;  %v3170_v25 = vld [vmem:[%s4001_s2 + $0x290] sm:$0xff] }
 0x224   :  { %v1182_v34 = vmax.f32 %v1149_v33, 0.0  ;;  %1265 = vrot.lane.b32.xlu2 %v3610_v5, %s3222_s15  ;;  %v584_v5 = vmax.f32 %v551_v50, 0.0  ;;  %v561_v50 = vmax.f32 %v494_v45, 0.0 }
 0x225   :  { %2062 = vmatpush.bf16.msra.mxu0 %v3106_v24 }
 0x226   :  { %v1214_v38 = vpack.c.bf16 %v1182_v34, %v1182_v34  ;;  %v616_v61 = vpack.c.bf16 %v584_v5, %v584_v5  ;;  %2075 = vmatpush.bf16.msra.mxu1 %v3115_v28  ;;  %v3112_v34 = vld [vmem:[%s4001_s2 + $0xc0] sm:$0xff]  ;;  %v593_v55 = vpack.c.bf16 %v561_v50, %v561_v50 }
 0x227   :  { %2091 = vmatpush.bf16.msra.mxu2 %v3121_v17 }
 0x228   :  { %v1517_v44 = vunpack.c.l.b16 %v1214_v38  ;;  %v1315_v2 = vunpack.c.l.b16 %v616_v61  ;;  %v1243_v58 = vunpack.c.l.b16 %v593_v55 }
 0x229   :  { %2063 = vmatpush.bf16.msra.mxu0 %v3105_v27  ;;  %v3169_v27 = vld [vmem:[%s4001_s2 + $0x288] sm:$0xff] }
 0x22a   :  { %v1518_v51 = vpack.c.b16 %v1517_v44, %v1516_v43  ;;  %v1316_v23 = vpack.c.b16 %v1315_v2, %v1314_v63  ;;  %2076 = vmatpush.bf16.msra.mxu1 %v3114_v14  ;;  %v3135_v44 = vld [vmem:[%s4001_s2 + $0x178] sm:$0xff]  ;;  %v3177_v14 = vld [vmem:[%s4001_s2 + $0x2c8] sm:$0xff] }
 0x22b   :  { %2092 = vmatpush.bf16.msra.mxu2 %v3120_v21  ;;  %2099 = vmatpush.bf16.msra.mxu3 %v3135_v44  ;;  %v3172_v21 = vld [vmem:[%s4001_s2 + $0x2a0] sm:$0xff] }
 0x22c   :  { %1519 = vrot.lane.b32.xlu0 %v1518_v51, %s3222_s15  ;;  %v562_v51 = vmax.f32 %v496_v46, 0.0 }
 0x22d   :  { %2064 = vmatpush.bf16.msra.mxu0 %v3104_v29 }
 0x22e   :  { %2077 = vmatpush.bf16.msra.mxu1 %v3113_v32  ;;  %v594_v39 = vpack.c.bf16 %v562_v51, %v562_v51 }
 0x230   :  { %v1244_v60 = vunpack.c.l.b16 %v594_v39  ;;  %v3211_v39 = vld [vmem:[%s4002_s3 + $0x4] ss:$0 sm:$0xff] }
 0x231   :  { %v1278_v20 = vpop.permute.xlu0 %1277 }
 0x232   :  { %2078 = vmatpush.bf16.msra.mxu1 %v3112_v34  ;;  %v1339_v37 = vsel %vm1319_vm1, %v3634_v41, %v1278_v20  ;;  %v3134_v41 = vld [vmem:[%s4001_s2 + $0x170] sm:$0xff]  ;;  %v1245_v61 = vpack.c.b16 %v1244_v60, %v1243_v58  ;;  %v3176_v60 = vld [vmem:[%s4001_s2 + $0x2c0] sm:$0xff] }
 0x233   :  { %2100 = vmatpush.bf16.msra.mxu3 %v3134_v41  ;;  %v3174_v20 = vld [vmem:[%s4001_s2 + $0x2b0] sm:$0xff] }
 0x234   :  { %1310 = vrot.lane.b32.xlu0 %v1309_v62, %s3221_s14  ;;  %v3130_v62 = vld [vmem:[%s4001_s2 + $0x150] sm:$0xff] }
 0x236   :  { %2228 = vmatpush.bf16.msrb.mxu1 %v3177_v14 }
 0x237   :  { %2101 = vmatpush.bf16.msra.mxu3 %v3133_v54 }
 0x23a   :  { %2229 = vmatpush.bf16.msrb.mxu1 %v3176_v60 }
 0x23b   :  { %2102 = vmatpush.bf16.msra.mxu3 %v3132_v53 }
 0x23c   :  { %1317 = vrot.lane.b32.xlu0 %v1316_v23, %s3222_s15 }
 0x23e   :  { %v1480_v26 = vpop.permute.xlu0 %1479 }
 0x23f   :  { %v1539_v31 = vsel %vm1319_vm1, %v3648_v1, %v1480_v26  ;;  %2103 = vmatpush.bf16.msra.mxu3 %v3131_v59 }
 0x241   :  { %v1285_v30 = vpop.permute.xlu1 %1284 }
 0x242   :  { %v1341_v38 = vsel %vm164_vm0, %v1339_v37, %v1285_v30  ;;  %v3168_v30 = vld [vmem:[%s4001_s2 + $0x280] sm:$0xff] }
 0x243   :  { %2104 = vmatpush.bf16.msra.mxu3 %v3130_v62 }
 0x247   :  { %2105 = vmatpush.bf16.msra.mxu3 %v3129_v4  ;;  %v3181_v4 = vld [vmem:[%s4001_s2 + $0x2e8] sm:$0xff] }
 0x24b   :  { %2106 = vmatpush.bf16.msra.mxu3 %v3128_v7  ;;  %v3180_v7 = vld [vmem:[%s4001_s2 + $0x2e0] sm:$0xff] }
 0x24e   :  { %v1487_v16 = vpop.permute.xlu0 %1486 }
 0x24f   :  { %v1541_v48 = vsel %vm164_vm0, %v1539_v31, %v1487_v16 }
 0x256   :  { %v1292_v35 = vpop.permute.xlu0 %1291 }
 0x257   :  { %v1343_v42 = vsel %vm1325_vm2, %v1341_v38, %v1292_v35 }
 0x25d   :  { %v1818_v24 = vpop.f32.mrf.mxu0 }
 0x25e   :  { %v1494_v33 = vpop.permute.xlu1 %1493 }
 0x25f   :  { %v1543_v15 = vsel %vm1325_vm2, %v1541_v48, %v1494_v33 }
 0x260   :  { %1845 = vmatmul.bf16.vlgmr.msrb.gmra.mxu2 %v1543_v15 }
 0x261   :  { %2298 = vmatpush.bf16.msrb.mxu2 %v3181_v4 }
 0x265   :  { %v1820_v29 = vpop.f32.mrf.mxu0  ;;  %2299 = vmatpush.bf16.msrb.mxu2 %v3180_v7 }
 0x266   :  { %v1506_v1 = vpop.permute.xlu2 %1505 }
 0x267   :  { %v1547_v9 = vsel %vm1319_vm1, %v3711_v13, %v1506_v1  ;;  %v3175_v13 = vld [vmem:[%s4001_s2 + $0x2b8] sm:$0xff] }
 0x268   :  { %2184 = vmatpush.bf16.msrb.mxu0 %v3175_v13 }
 0x26c   :  { %2185 = vmatpush.bf16.msrb.mxu0 %v3174_v20 }
 0x26e   :  { %v1233_v43 = vpop.permute.xlu2 %1232 }
 0x26f   :  { %v1324_v6 = vsel %vm164_vm0, %v3605_v0, %v1233_v43 }
 0x270   :  { %2093 = vmatmul.bf16.vlgmr.msra.gmra.mxu2 %v1343_v42 }
 0x271   :  { %v1304_v47 = vpop.permute.xlu1 %1303 }
 0x272   :  { %v1347_v52 = vsel %vm1319_vm1, %v3706_v56, %v1304_v47  ;;  %v3173_v56 = vld [vmem:[%s4001_s2 + $0x2a8] sm:$0xff] }
 0x273   :  { %2186 = vmatpush.bf16.msrb.mxu0 %v3173_v56 }
 0x276   :  { %v1252_v5 = vpop.permute.xlu2 %1251 }
 0x277   :  { %v1331_v63 = vsel %vm1319_vm1, %v1245_v61, %v1252_v5  ;;  %2187 = vmatpush.bf16.msrb.mxu0 %v3172_v21  ;;  %v3212_v61 = vld [vmem:[%s4002_s3 + $0x5] ss:$0 sm:$0xff] }
 0x279   :  { %v1240_v49 = vpop.permute.xlu1 %1239 }
 0x27a   :  { %v1327_v57 = vsel %vm1325_vm2, %v1324_v6, %v1240_v49 }
 0x27b   :  { %2065 = vmatmul.bf16.vlgmr.msra.gmra.mxu0 %v1327_v57 }
 0x27c   :  { %2188 = vmatpush.bf16.msrb.mxu0 %v3171_v22 }
 0x27e   :  { %v1266_v2 = vpop.permute.xlu2 %1265 }
 0x280   :  { %2189 = vmatpush.bf16.msrb.mxu0 %v3170_v25 }
 0x281   :  { %v1259_v0 = vpop.permute.xlu1 %1258 }
 0x282   :  { %v1333_v3 = vsel %vm164_vm0, %v1331_v63, %v1259_v0 }
 0x283   :  { %v1335_v23 = vsel %vm1325_vm2, %v1333_v3, %v1266_v2 }
 0x284   :  { %2079 = vmatmul.bf16.vlgmr.msra.gmra.mxu1 %v1335_v23  ;;  %2190 = vmatpush.bf16.msrb.mxu0 %v3169_v27 }
 0x288   :  { %2191 = vmatpush.bf16.msrb.mxu0 %v3168_v30 }
 0x28e   :  { %v1513_v36 = vpop.permute.xlu0 %1512  ;;  %v1832_v26 = vpop.f32.mrf.mxu1 }
 0x28f   :  { %v1549_v10 = vsel %vm164_vm0, %v1547_v9, %v1513_v36  ;;  %v1833_v33 = vadd.f32 %v1832_v26, %v1818_v24  ;;  %v3213_v36 = vld [vmem:[%s4002_s3 + $0x6] ss:$0 sm:$0xff]  ;;  %v3179_v9 = vld [vmem:[%s4001_s2 + $0x2d8] sm:$0xff]  ;;  %v3178_v26 = vld [vmem:[%s4001_s2 + $0x2d0] sm:$0xff] }
 0x290   :  { %2300 = vmatpush.bf16.msrb.mxu2 %v3179_v9 }
 0x294   :  { %2301 = vmatpush.bf16.msrb.mxu2 %v3178_v26 }
 0x296   :  { %v1834_v16 = vpop.f32.mrf.mxu1 }
 0x297   :  { %v1835_v15 = vadd.f32 %v1834_v16, %v1820_v29 }
 0x29e   :  { %v1520_v40 = vpop.permute.xlu0 %1519 }
 0x29f   :  { %v1551_v11 = vsel %vm1325_vm2, %v1549_v10, %v1520_v40 }
 0x2a0   :  { %1859 = vmatmul.bf16.vlgmr.msrb.gmra.mxu3 %v1551_v11 }
 0x2a6   :  { %v1311_v12 = vpop.permute.xlu0 %1310 }
 0x2a7   :  { %v1349_v17 = vsel %vm164_vm0, %v1347_v52, %v1311_v12 }
 0x2ae   :  { %v1318_v18 = vpop.permute.xlu0 %1317 }
 0x2af   :  { %v1351_v19 = vsel %vm1325_vm2, %v1349_v17, %v1318_v18 }
 0x2b0   :  { %2107 = vmatmul.bf16.vlgmr.msra.gmra.mxu3 %v1351_v19 }
 0x2e3   :  { %v1846_v28 = vpop.f32.mrf.mxu2 }
 0x2e4   :  { %v1847_v8 = vadd.f32 %v1846_v28, %v1833_v33  ;;  %v3187_v33 = vld [vmem:[%s4001_s2 + $0x318] sm:$0xff] }
 0x2eb   :  { %v1848_v32 = vpop.f32.mrf.mxu2 }
 0x2ec   :  { %v1849_v35 = vadd.f32 %v1848_v32, %v1835_v15  ;;  %v3188_v32 = vld [vmem:[%s4001_s2 + $0x320] sm:$0xff] }
 0x2f3   :  { %v2094_v42 = vpop.f32.mrf.mxu2 }
 0x2f8   :  { %v2066_v48 = vpop.f32.mrf.mxu0 }
 0x2fb   :  { %v2096_v54 = vpop.f32.mrf.mxu2 }
 0x300   :  { %v2068_v44 = vpop.f32.mrf.mxu0 }
 0x301   :  { %v2080_v34 = vpop.f32.mrf.mxu1 }
 0x309   :  { %v2082_v47 = vpop.f32.mrf.mxu1 }
 0x323   :  { %v1860_v31 = vpop.f32.mrf.mxu3 }
 0x324   :  { %v1861_v37 = vadd.f32 %v1860_v31, %v1847_v8  ;;  %v3189_v31 = vld [vmem:[%s4001_s2 + $0x328] sm:$0xff] }
 0x325   :  { %2397 = vmatpush.bf16.msrb.mxu3 %v3189_v31 }
 0x326   :  { %v2067_v43 = vadd.f32 %v2066_v48, %v1861_v37  ;;  %v3214_v48 = vld [vmem:[%s4002_s3 + $0x7] ss:$0 sm:$0xff] }
 0x328   :  { %v2081_v41 = vadd.f32 %v2080_v34, %v2067_v43  ;;  %v3186_v34 = vld [vmem:[%s4001_s2 + $0x310] sm:$0xff]  ;;  %v3184_v43 = vld [vmem:[%s4001_s2 + $0x300] sm:$0xff] }
 0x329   :  { %2398 = vmatpush.bf16.msrb.mxu3 %v3188_v32 }
 0x32a   :  { %v2095_v51 = vadd.f32 %v2094_v42, %v2081_v41 }
 0x32b   :  { %v1862_v1 = vpop.f32.mrf.mxu3 }
 0x32c   :  { %v1863_v38 = vadd.f32 %v1862_v1, %v1849_v35  ;;  %v3185_v35 = vld [vmem:[%s4001_s2 + $0x308] sm:$0xff] }
 0x32d   :  { %2399 = vmatpush.bf16.msrb.mxu3 %v3187_v33 }
 0x32e   :  { %v2069_v45 = vadd.f32 %v2068_v44, %v1863_v38 }
 0x330   :  { %v2083_v50 = vadd.f32 %v2082_v47, %v2069_v45 }
 0x331   :  { %2400 = vmatpush.bf16.msrb.mxu3 %v3186_v34 }
 0x332   :  { %v2097_v5 = vadd.f32 %v2096_v54, %v2083_v50 }
 0x333   :  { %v2108_v46 = vpop.f32.mrf.mxu3 }
 0x334   :  { %v2109_v55 = vadd.f32 %v2108_v46, %v2095_v51 }
 0x335   :  { %2401 = vmatpush.bf16.msrb.mxu3 %v3185_v35 }
 0x336   :  { %v2115_v49 = vadd.f32 %v3211_v39, %v2109_v55 }
 0x339   :  { %2402 = vmatpush.bf16.msrb.mxu3 %v3184_v43 }
 0x33b   :  { %v2110_v53 = vpop.f32.mrf.mxu3 }
 0x33c   :  { %v2111_v6 = vadd.f32 %v2110_v53, %v2097_v5  ;;  %v3182_v5 = vld [vmem:[%s4001_s2 + $0x2f0] sm:$0xff] }
 0x33e   :  { %v2116_v57 = vadd.f32 %v3211_v39, %v2111_v6  ;;  %v3183_v39 = vld [vmem:[%s4001_s2 + $0x2f8] sm:$0xff] }
 0x33f   :  { %2403 = vmatpush.bf16.msrb.mxu3 %v3183_v39 }
 0x340   :  { %v2117_v58 = vpack.c.bf16 %v2116_v57, %v2115_v49 }
 0x342   :  { %2192 = vmatmul.bf16.vlgmr.msrb.gmra.mxu0 %v2117_v58 }
 0x343   :  { %2404 = vmatpush.bf16.msrb.mxu3 %v3182_v5 }
 0x3bf   :  { %v2193_v59 = vpop.f32.mrf.mxu0 }
 0x3c0   :  { %v2194_v62 = vadd.f32 %v3212_v61, %v2193_v59 }
 0x3c2   :  { %v2198_v2 = vmax.f32 %v2194_v62, 0.0  ;;  %v2411_v62 = vlaneseq }
 0x3c7   :  { %v2195_v63 = vpop.f32.mrf.mxu0 }
 0x3c8   :  { %v2196_v0 = vadd.f32 %v3212_v61, %v2195_v63  ;;  %v3215_v63 = vld [vmem:[%s4002_s3 + $0x8] ss:$0 sm:$0xff] }
 0x3ca   :  { %v2199_v3 = vmax.f32 %v2196_v0, 0.0  ;;  %v2412_v0 = vshrl.u32 %v2411_v62, 7 }
 0x3cc   :  { %v2200_v23 = vpack.c.bf16 %v2199_v3, %v2198_v2  ;;  %vm2414_vm3 = vcmp.lt.s32.totalorder %v2412_v0, 2 }
 0x3ce   :  { %3006 = vmatmul.msk.bf16.vlgmr.msrb.gmra.mxu1 %vm1319_vm1, %v2200_v23 }
 0x44b   :  { %v2231_v10 = vpop.f32.mrf.mxu1 }
 0x44c   :  { %v2232_v40 = vadd.f32 %v3213_v36, %v2231_v10 }
 0x44e   :  { %v2236_v11 = vadd.f32 3.0, %v2232_v40 }
 0x450   :  { %v2238_v12 = vmax.f32 %v2236_v11, 0.0 }
 0x452   :  { %v2240_v18 = vmin.f32 %v2238_v12, 6.0 }
 0x453   :  { %v2233_v52 = vpop.f32.mrf.mxu1 }
 0x454   :  { %v2234_v17 = vadd.f32 %v3213_v36, %v2233_v52  ;;  %v2242_v20 = vmul.f32 %v2240_v18, %v2232_v40 }
 0x456   :  { %v2237_v19 = vadd.f32 3.0, %v2234_v17  ;;  %v2244_v22 = vmul.f32 0.16666667, %v2242_v20 }
 0x458   :  { %v2239_v13 = vmax.f32 %v2237_v19, 0.0 }
 0x45a   :  { %v2241_v56 = vmin.f32 %v2239_v13, 6.0 }
 0x45c   :  { %v2243_v21 = vmul.f32 %v2241_v56, %v2234_v17 }
 0x45e   :  { %v2245_v24 = vmul.f32 0.16666667, %v2243_v21 }
 0x460   :  { %v3197_v25 = vpack.i.bf16 %v2245_v24, %v2244_v22 }
 0x462   :  { %3198 = vrot.lane.b32.xlu0 %v3197_v25, %s3220_s13 }
 0x4d4   :  { %v3199_v27 = vpop.permute.xlu0 %3198 }
 0x4d5   :  { %v3201_v28 = vunpack.i.h.bf16 %v3199_v27  ;;  %v3200_v30 = vunpack.i.l.bf16 %v3199_v27 }
 0x4d7   :  { %v2255_v29 = vsel %vm1319_vm1, %v2199_v3, %v3201_v28  ;;  %v2254_v14 = vsel %vm1319_vm1, %v2198_v2, %v3200_v30 }
 0x4d8   :  { %v2256_v16 = vpack.c.bf16 %v2255_v29, %v2254_v14 }
 0x4da   :  { %3023 = vmatmul.msk.bf16.vlgmr.msrb.gmra.mxu2 %vm164_vm0, %v2256_v16 }
 0x55d   :  { %v2303_v15 = vpop.f32.mrf.mxu2 }
 0x55e   :  { %v2304_v8 = vadd.f32 %v3214_v48, %v2303_v15 }
 0x560   :  { %v2308_v1 = vadd.f32 3.0, %v2304_v8 }
 0x562   :  { %v2310_v37 = vmax.f32 %v2308_v1, 0.0 }
 0x564   :  { %v2312_v44 = vmin.f32 %v2310_v37, 6.0 }
 0x565   :  { %v2305_v38 = vpop.f32.mrf.mxu2 }
 0x566   :  { %v2306_v42 = vadd.f32 %v3214_v48, %v2305_v38  ;;  %v2314_v41 = vmul.f32 %v2312_v44, %v2304_v8 }
 0x568   :  { %v2309_v45 = vadd.f32 3.0, %v2306_v42  ;;  %v2316_v51 = vmul.f32 0.16666667, %v2314_v41 }
 0x56a   :  { %v2311_v46 = vmax.f32 %v2309_v45, 0.0 }
 0x56c   :  { %v2313_v47 = vmin.f32 %v2311_v46, 6.0 }
 0x56e   :  { %v2315_v50 = vmul.f32 %v2313_v47, %v2306_v42 }
 0x570   :  { %v2317_v54 = vmul.f32 0.16666667, %v2315_v50 }
 0x572   :  { %v3202_v55 = vpack.i.bf16 %v2317_v54, %v2316_v51 }
 0x574   :  { %3203 = vrot.lane.b32.xlu1 %v3202_v55, %s3221_s14 }
 0x5e6   :  { %v3204_v53 = vpop.permute.xlu1 %3203 }
 0x5e7   :  { %v3206_v6 = vunpack.i.h.bf16 %v3204_v53  ;;  %v3205_v49 = vunpack.i.l.bf16 %v3204_v53 }
 0x5e9   :  { %v2327_v57 = vsel %vm164_vm0, %v2255_v29, %v3206_v6  ;;  %v2326_v58 = vsel %vm164_vm0, %v2254_v14, %v3205_v49 }
 0x5ea   :  { %v2329_v60 = vmax.f32 %v2327_v57, 0.0  ;;  %v2328_v59 = vmax.f32 %v2326_v58, 0.0 }
 0x5ec   :  { %v2330_v61 = vpack.c.bf16 %v2329_v60, %v2328_v59 }
 0x5ee   :  { %2405 = vmatmul.bf16.vlgmr.msrb.gmra.mxu3 %v2330_v61 }
 0x671   :  { %v2406_v2 = vpop.f32.mrf.mxu3 }
 0x672   :  { %v2407_v3 = vadd.f32 %v3215_v63, %v2406_v2 }
 0x674   :  { %v2416_v23 = vmul.f32 %v2407_v3, %v2407_v3 }
 0x676   :  { %v2418_v4 = vsel %vm2414_vm3, %v2416_v23, 0.0 }
 0x677   :  { %v2421_v7 = vsel %vm2420_vm4, %v2418_v4, 0.0 }
 0x678   :  { %2424 = vadd.xlane.f32.xlu2 %v2421_v7 }
 0x679   :  { %v2408_v24 = vpop.f32.mrf.mxu3 }
 0x67a   :  { %v2409_v25 = vadd.f32 %v3215_v63, %v2408_v24 }
 0x6eb   :  { %v2425_v36 = vpop.xlane.xlu2 %2424 }
 0x6ec   :  { %v2426_v9 = vrot.slane %v2425_v36, 4 }
 0x6ee   :  { %v2427_v10 = vadd.f32 %v2426_v9, %v2425_v36 }
 0x6f0   :  { %v2428_v40 = vrot.slane %v2427_v10, 2 }
 0x6f2   :  { %v2429_v11 = vadd.f32 %v2428_v40, %v2427_v10 }
 0x6f4   :  { %v2430_v12 = vrot.slane %v2429_v11, 1 }
 0x6f6   :  { %v2431_v52 = vadd.f32 %v2430_v12, %v2429_v11 }
 0x6f8   :  { %3190 = vpush %v2431_v52 }
 0x729   :  { %s3191_s2 = spop %3190 }
 0x72a   :  { %v2433_v17 = vstv %s3191_s2 }
 0x72b   :  { %3216 = vrsqrt.f32 %v2433_v17  ;;  %vm2440_vm6 = vweird.f32 %v2433_v17 }
 0x731   :  { %v3217_v18 = vpop.eup %3216 }
 0x732   :  { %v2435_v19 = vmul.f32 %v3217_v18, %v2433_v17  ;;  %vm2441_vm5 = vweird.f32 %v3217_v18 }
 0x733   :  { %vm2442_vm7 = vmor %vm2440_vm6, %vm2441_vm5 }
 0x734   :  { %v2436_v13 = vmul.f32 %v3217_v18, %v2435_v19 }
 0x736   :  { %v2437_v20 = vmul.f32 0.5, %v2436_v13 }
 0x738   :  { %v2438_v56 = vsub.f32 1.5, %v2437_v20 }
 0x73a   :  { %v2439_v21 = vmul.f32 %v3217_v18, %v2438_v56 }
 0x73c   :  { %v2443_v22 = vsel %vm2442_vm7, %v3217_v18, %v2439_v21 }
 0x73d   :  { %3192 = vpush %v2443_v22 }
 0x76e   :  { %s3193_s3 = spop %3192 }
 0x76f   :  { %v2445_v26 = vstv %s3193_s3 }
 0x770   :  { %v2446_v27 = vmul.f32 %v2445_v26, %v2407_v3  ;;  %v2447_v28 = vmul.f32 %v2445_v26, %v2409_v25 }
 0x772   :  { %2448 = vst.msk [vmem:[%s4005_s4] sm:$0xff] %vm2420_vm4, %v2446_v27 }
 0x773   :  { %2449 = vst.msk [vmem:[%s4005_s4 + $0x8] sm:$0xff] %vm2420_vm4, %v2447_v28 }

</bundles_post_ra>
